<compile_context>
chip_gen: v7x
topology: tpu7x:2x2x1
jax: 0.10.0
libtpu: 0.0.40
codegen_flags: <defaults>
</compile_context>

<pallas_src>
import functools

import jax
import jax.numpy as jnp
from jax.experimental import pallas as pl
from jax.experimental.pallas import tpu as pltpu


def _round_up(x, m):
    return (x + m - 1) // m * m


def _tcn_block_kernel(
    xp_ref,   # (BB, Tp, Cin)   left-padded input (compute dtype)
    w1_ref,   # (K*Cin, Cout)   BN-folded conv1 weight, im2col layout
    s1_ref,   # (1, Cout)       folded bias+BN shift (f32)
    w2_ref,   # (K*Cout, CoutP) BN-folded conv2 weight, out-padded to CoutP
    s2_ref,   # (1, CoutP)
    wp_ref,   # (Cin, CoutP)    1x1 projection weight (identity if in==out)
    bp_ref,   # (1, CoutP)
    o_ref,    # (BB, T, CoutP)
    *,
    kernel_size,
    dilation,
):
    K = kernel_size
    BB, Tp, cin = xp_ref.shape
    T = o_ref.shape[1]
    coutp = o_ref.shape[2]
    cout = w1_ref.shape[1]
    pad = Tp - T
    cdt = w1_ref.dtype          # matmul operand dtype (bf16 or f32)

    xp = xp_ref[...]            # (BB, Tp, Cin)

    # ---- stage 1: causal dilated conv1 as a single im2col matmul ----------
    cols1 = jnp.concatenate(
        [xp[:, k * dilation:k * dilation + T, :] for k in range(K)],
        axis=2).reshape(BB * T, K * cin)
    h1 = jnp.dot(cols1.astype(cdt), w1_ref[...],
                 preferred_element_type=jnp.float32)          # (BB*T, Cout)
    h1 = jnp.maximum(h1 + s1_ref[...], 0.0)

    # ---- stage 2: causal left-pad kept in registers, single matmul --------
    h1p = jnp.concatenate(
        [jnp.zeros((BB, pad, cout), jnp.float32),
         h1.reshape(BB, T, cout)], axis=1)                    # (BB, Tp, Cout)
    cols2 = jnp.concatenate(
        [h1p[:, k * dilation:k * dilation + T, :] for k in range(K)],
        axis=2).reshape(BB * T, K * cout)
    h2 = jnp.dot(cols2.astype(cdt), w2_ref[...],
                 preferred_element_type=jnp.float32)          # (BB*T, CoutP)
    h2 = jnp.maximum(h2 + s2_ref[...], 0.0)

    # ---- residual path: 1x1 channel projection -----------------------------
    xres = xp[:, pad:, :].reshape(BB * T, cin)
    res = jnp.dot(xres.astype(cdt), wp_ref[...],
                  preferred_element_type=jnp.float32) + bp_ref[...]

    # ---- final add + ReLU, lane-dense store --------------------------------
    out = jnp.maximum(h2 + res, 0.0)                          # (BB*T, CoutP)
    o_ref[...] = out.reshape(BB, T, coutp).astype(o_ref.dtype)


def tcn_block(x_nct, params, *, kernel_size, dilation,
              compute_dtype=jnp.bfloat16, batch_block=None):
    """x_nct: (B, Cin, T) float32 (PyTorch NCT layout). Returns (B, Cout, T)."""
    B, Cin, T = x_nct.shape
    K = kernel_size
    pad = (K - 1) * dilation
    Tp = T + pad
    Cout = params["w1"].shape[2]
    CoutP = _round_up(Cout, 128)
    cpad = CoutP - Cout
    eps = 0.001

    if batch_block is None:
        batch_block = B              # fold whole batch into one grid step
    assert B % batch_block == 0
    n_steps = B // batch_block

    # transpose to NTC and left-pad time axis (causal padding, per-batch)
    x_ntc = jnp.transpose(x_nct, (0, 2, 1))                   # (B, T, Cin)
    xp = jnp.pad(x_ntc, ((0, 0), (pad, 0), (0, 0))).astype(compute_dtype)

    # fold conv bias + BatchNorm (inference stats) into weight / shift
    def fold(w, bias, g, beta, m, v):
        scale = g / jnp.sqrt(v + eps)                         # (Cout,)
        shift = (bias - m) * scale + beta
        return w * scale[None, None, :], shift

    w1f, sh1 = fold(params["w1"], params["b1"], params["bn1_g"],
                    params["bn1_b"], params["bn1_m"], params["bn1_v"])
    w2f, sh2 = fold(params["w2"], params["b2"], params["bn2_g"],
                    params["bn2_b"], params["bn2_m"], params["bn2_v"])

    w1f = w1f.reshape(K * Cin, Cout).astype(compute_dtype)
    sh1 = sh1.reshape(1, Cout).astype(jnp.float32)

    # stage-2 / projection outputs padded to lane-dense CoutP (zeros)
    w2f = jnp.pad(w2f.reshape(K * Cout, Cout),
                  ((0, 0), (0, cpad))).astype(compute_dtype)
    sh2 = jnp.pad(sh2.reshape(1, Cout), ((0, 0), (0, cpad))).astype(jnp.float32)

    if "wp" in params:
        wp = params["wp"]
        bp = params["bp"].reshape(1, Cout)
    else:
        # identity residual when in_ch == out_ch (x @ I is exact)
        wp = jnp.eye(Cin, Cout, dtype=jnp.float32)
        bp = jnp.zeros((1, Cout), jnp.float32)
    wp = jnp.pad(wp, ((0, 0), (0, cpad))).astype(compute_dtype)
    bp = jnp.pad(bp, ((0, 0), (0, cpad))).astype(jnp.float32)

    kern = functools.partial(_tcn_block_kernel,
                             kernel_size=K, dilation=dilation)

    grid_spec = pltpu.PrefetchScalarGridSpec(
        num_scalar_prefetch=0,
        grid=(n_steps,),
        in_specs=[
            pl.BlockSpec((batch_block, Tp, Cin), lambda g: (g, 0, 0)),   # xp
            pl.BlockSpec((K * Cin, Cout), lambda g: (0, 0)),             # w1
            pl.BlockSpec((1, Cout), lambda g: (0, 0)),                   # s1
            pl.BlockSpec((K * Cout, CoutP), lambda g: (0, 0)),           # w2
            pl.BlockSpec((1, CoutP), lambda g: (0, 0)),                  # s2
            pl.BlockSpec((Cin, CoutP), lambda g: (0, 0)),                # wp
            pl.BlockSpec((1, CoutP), lambda g: (0, 0)),                  # bp
        ],
        out_specs=pl.BlockSpec((batch_block, T, CoutP), lambda g: (g, 0, 0)),
    )

    out_pad = pl.pallas_call(
        kern,
        out_shape=jax.ShapeDtypeStruct((B, T, CoutP), jnp.float32),
        grid_spec=grid_spec,
        compiler_params=pltpu.CompilerParams(
            dimension_semantics=("parallel",)),
    )(xp, w1f, sh1, w2f, sh2, wp, bp)

    # slice away the lane padding, back to PyTorch NCT
    return jnp.transpose(out_pad[:, :, :Cout], (0, 2, 1))     # (B, Cout, T)


def tcn_block_reference(x_nct, params, *, kernel_size, dilation):
    """Pure-JAX f32 reference with original (unfolded) semantics."""
    B, Cin, T = x_nct.shape
    K = kernel_size
    pad = (K - 1) * dilation
    Cout = params["w1"].shape[2]
    eps = 0.001
    x = jnp.transpose(x_nct, (0, 2, 1))
    xp = jnp.pad(x, ((0, 0), (pad, 0), (0, 0)))

    def causal_conv(inp_pad, w, b):
        acc = jnp.zeros((B, T, w.shape[2]), jnp.float32)
        for k in range(K):
            acc = acc + jnp.einsum("bti,io->bto",
                                   inp_pad[:, k * dilation:k * dilation + T, :],
                                   w[k])
        return acc + b.reshape(1, 1, -1)

    def bn(h, g, bta, m, v):
        return (h - m) / jnp.sqrt(v + eps) * g + bta

    h = jnp.maximum(bn(causal_conv(xp, params["w1"], params["b1"]),
                       params["bn1_g"], params["bn1_b"],
                       params["bn1_m"], params["bn1_v"]), 0.0)
    hp = jnp.pad(h, ((0, 0), (pad, 0), (0, 0)))
    h = jnp.maximum(bn(causal_conv(hp, params["w2"], params["b2"]),
                       params["bn2_g"], params["bn2_b"],
                       params["bn2_m"], params["bn2_v"]), 0.0)
    if "wp" in params:
        res = (jnp.einsum("bti,io->bto", x, params["wp"])
               + params["bp"].reshape(1, 1, -1))
    else:
        res = x
    out = jnp.maximum(h + res, 0.0)
    return jnp.transpose(out, (0, 2, 1))


if __name__ == "__main__":
    # TODO(synk): BatchNorm uses folded inference statistics and Dropout is the
    # identity; PyTorch training-mode batch statistics are not reproduced.
    B, Cin, Cout, T = 2, 16, 32, 64
    K, dilation = 4, 2

    key = jax.random.PRNGKey(0)
    ks = jax.random.split(key, 12)

    params = dict(
        # conv weights stored as (K, in, out) == transposed PyTorch (out, in, K)
        w1=0.1 * jax.random.normal(ks[0], (K, Cin, Cout), jnp.float32),
        b1=0.1 * jax.random.normal(ks[1], (Cout,), jnp.float32),
        w2=0.1 * jax.random.normal(ks[2], (K, Cout, Cout), jnp.float32),
        b2=0.1 * jax.random.normal(ks[3], (Cout,), jnp.float32),
        wp=0.1 * jax.random.normal(ks[4], (Cin, Cout), jnp.float32),
        bp=0.1 * jax.random.normal(ks[5], (Cout,), jnp.float32),
        bn1_g=1.0 + 0.1 * jax.random.normal(ks[6], (Cout,), jnp.float32),
        bn1_b=0.1 * jax.random.normal(ks[7], (Cout,), jnp.float32),
        bn1_m=0.1 * jax.random.normal(ks[8], (Cout,), jnp.float32),
        bn1_v=jnp.abs(jax.random.normal(ks[9], (Cout,), jnp.float32)) + 0.5,
        bn2_g=1.0 + 0.1 * jax.random.normal(ks[10], (Cout,), jnp.float32),
        bn2_b=0.1 * jax.random.normal(ks[11], (Cout,), jnp.float32),
        bn2_m=jnp.zeros((Cout,), jnp.float32),
        bn2_v=jnp.ones((Cout,), jnp.float32),
    )

    x = jax.random.normal(jax.random.PRNGKey(42), (B, Cin, T), jnp.float32)

    ref = tcn_block_reference(x, params, kernel_size=K, dilation=dilation)

    # f32 operands: tight numerical check against the reference
    out_f32 = tcn_block(x, params, kernel_size=K, dilation=dilation,
                        compute_dtype=jnp.float32)
    out_f32 = jax.block_until_ready(out_f32)
    assert out_f32.shape == (B, Cout, T)
    assert jnp.allclose(out_f32, ref, atol=1e-4, rtol=1e-4), "f32 mismatch"

    # bf16 MXU-operand fast path (f32 accumulation): loose tolerance check
    out_bf16 = tcn_block(x, params, kernel_size=K, dilation=dilation,
                         compute_dtype=jnp.bfloat16)
    out_bf16 = jax.block_until_ready(out_bf16)
    assert out_bf16.shape == (B, Cout, T)
    assert jnp.allclose(out_bf16, ref, atol=1e-1, rtol=1e-1), "bf16 mismatch"

    print("KERNEL_OK")
</pallas_src>

<mosaic_0001>
module attributes {stable_mosaic.version = 11 : i64} {
  func.func @_tcn_block_kernel(%arg0: i32, %arg1: memref<2x70x16xf32, #tpu.memory_space<vmem>>, %arg2: memref<64x32xf32, #tpu.memory_space<vmem>>, %arg3: memref<1x32xf32, #tpu.memory_space<vmem>>, %arg4: memref<128x128xf32, #tpu.memory_space<vmem>>, %arg5: memref<1x128xf32, #tpu.memory_space<vmem>>, %arg6: memref<16x128xf32, #tpu.memory_space<vmem>>, %arg7: memref<1x128xf32, #tpu.memory_space<vmem>>, %arg8: memref<2x64x128xf32, #tpu.memory_space<vmem>>) attributes {dimension_semantics = [#tpu.dimension_semantics<parallel>], iteration_bounds = array<i64: 1>, scalar_prefetch = 0 : i64, scratch_operands = 0 : i64, tpu.core_type = #tpu.core_type<tc>, window_params = [{transform_indices = @transform_0, window_bounds = array<i64: 2, 70, 16>}, {pipeline_mode = #tpu.pipeline_mode<synchronous>, transform_indices = @transform_1, window_bounds = array<i64: 64, 32>}, {pipeline_mode = #tpu.pipeline_mode<synchronous>, transform_indices = @transform_2, window_bounds = array<i64: 1, 32>}, {pipeline_mode = #tpu.pipeline_mode<synchronous>, transform_indices = @transform_3, window_bounds = array<i64: 128, 128>}, {pipeline_mode = #tpu.pipeline_mode<synchronous>, transform_indices = @transform_4, window_bounds = array<i64: 1, 128>}, {pipeline_mode = #tpu.pipeline_mode<synchronous>, transform_indices = @transform_5, window_bounds = array<i64: 16, 128>}, {pipeline_mode = #tpu.pipeline_mode<synchronous>, transform_indices = @transform_6, window_bounds = array<i64: 1, 128>}, {transform_indices = @transform_7, window_bounds = array<i64: 2, 64, 128>}]} {
    %c0 = arith.constant 0 : index
    %c0_0 = arith.constant 0 : index
    %c0_1 = arith.constant 0 : index
    %0 = vector.load %arg1[%c0, %c0_0, %c0_1] : memref<2x70x16xf32, #tpu.memory_space<vmem>>, vector<2x70x16xf32>
    %1 = vector.extract_strided_slice %0 {offsets = [0, 0, 0], sizes = [2, 64, 16], strides = [1, 1, 1]} : vector<2x70x16xf32> to vector<2x64x16xf32>
    %2 = vector.extract_strided_slice %0 {offsets = [0, 2, 0], sizes = [2, 64, 16], strides = [1, 1, 1]} : vector<2x70x16xf32> to vector<2x64x16xf32>
    %3 = vector.extract_strided_slice %0 {offsets = [0, 4, 0], sizes = [2, 64, 16], strides = [1, 1, 1]} : vector<2x70x16xf32> to vector<2x64x16xf32>
    %4 = vector.extract_strided_slice %0 {offsets = [0, 6, 0], sizes = [2, 64, 16], strides = [1, 1, 1]} : vector<2x70x16xf32> to vector<2x64x16xf32>
    %5 = tpu.concatenate %1, %2, %3, %4 in 2 : vector<2x64x16xf32>, vector<2x64x16xf32>, vector<2x64x16xf32>, vector<2x64x16xf32> -> vector<2x64x64xf32>
    %6 = vector.shape_cast %5 : vector<2x64x64xf32> to vector<128x64xf32>
    %c0_2 = arith.constant 0 : index
    %c0_3 = arith.constant 0 : index
    %7 = vector.load %arg2[%c0_2, %c0_3] : memref<64x32xf32, #tpu.memory_space<vmem>>, vector<64x32xf32>
    %cst = arith.constant dense<0.000000e+00> : vector<128x32xf32>
    %8 = tpu.matmul %6, %7, %cst {dimension_numbers = #tpu.dot_dimension_numbers<[1], [0], [0], [1], [0, 0, 1, 1], [], []>} : vector<128x64xf32>, vector<64x32xf32>, vector<128x32xf32> -> vector<128x32xf32>
    %c0_4 = arith.constant 0 : index
    %c0_5 = arith.constant 0 : index
    %9 = vector.load %arg3[%c0_4, %c0_5] : memref<1x32xf32, #tpu.memory_space<vmem>>, vector<1x32xf32>
    %10 = vector.broadcast %9 : vector<1x32xf32> to vector<128x32xf32>
    %11 = arith.addf %8, %10 : vector<128x32xf32>
    %cst_6 = arith.constant 0.000000e+00 : f32
    %12 = vector.broadcast %cst_6 : f32 to vector<128x32xf32>
    %13 = arith.maximumf %11, %12 : vector<128x32xf32>
    %cst_7 = arith.constant 0.000000e+00 : f32
    %14 = vector.broadcast %cst_7 : f32 to vector<2x6x32xf32>
    %15 = vector.shape_cast %13 : vector<128x32xf32> to vector<2x64x32xf32>
    %16 = tpu.concatenate %14, %15 in 1 : vector<2x6x32xf32>, vector<2x64x32xf32> -> vector<2x70x32xf32>
    %17 = vector.extract_strided_slice %16 {offsets = [0, 0, 0], sizes = [2, 64, 32], strides = [1, 1, 1]} : vector<2x70x32xf32> to vector<2x64x32xf32>
    %18 = vector.extract_strided_slice %16 {offsets = [0, 2, 0], sizes = [2, 64, 32], strides = [1, 1, 1]} : vector<2x70x32xf32> to vector<2x64x32xf32>
    %19 = vector.extract_strided_slice %16 {offsets = [0, 4, 0], sizes = [2, 64, 32], strides = [1, 1, 1]} : vector<2x70x32xf32> to vector<2x64x32xf32>
    %20 = vector.extract_strided_slice %16 {offsets = [0, 6, 0], sizes = [2, 64, 32], strides = [1, 1, 1]} : vector<2x70x32xf32> to vector<2x64x32xf32>
    %21 = tpu.concatenate %17, %18, %19, %20 in 2 : vector<2x64x32xf32>, vector<2x64x32xf32>, vector<2x64x32xf32>, vector<2x64x32xf32> -> vector<2x64x128xf32>
    %22 = vector.shape_cast %21 : vector<2x64x128xf32> to vector<128x128xf32>
    %c0_8 = arith.constant 0 : index
    %c0_9 = arith.constant 0 : index
    %23 = vector.load %arg4[%c0_8, %c0_9] : memref<128x128xf32, #tpu.memory_space<vmem>>, vector<128x128xf32>
    %cst_10 = arith.constant dense<0.000000e+00> : vector<128x128xf32>
    %24 = tpu.matmul %22, %23, %cst_10 {dimension_numbers = #tpu.dot_dimension_numbers<[1], [0], [0], [1], [0, 0, 1, 1], [], []>} : vector<128x128xf32>, vector<128x128xf32>, vector<128x128xf32> -> vector<128x128xf32>
    %c0_11 = arith.constant 0 : index
    %c0_12 = arith.constant 0 : index
    %25 = vector.load %arg5[%c0_11, %c0_12] : memref<1x128xf32, #tpu.memory_space<vmem>>, vector<1x128xf32>
    %26 = vector.broadcast %25 : vector<1x128xf32> to vector<128x128xf32>
    %27 = arith.addf %24, %26 : vector<128x128xf32>
    %cst_13 = arith.constant 0.000000e+00 : f32
    %28 = vector.broadcast %cst_13 : f32 to vector<128x128xf32>
    %29 = arith.maximumf %27, %28 : vector<128x128xf32>
    %30 = vector.extract_strided_slice %0 {offsets = [0, 6, 0], sizes = [2, 64, 16], strides = [1, 1, 1]} : vector<2x70x16xf32> to vector<2x64x16xf32>
    %31 = vector.shape_cast %30 : vector<2x64x16xf32> to vector<128x16xf32>
    %c0_14 = arith.constant 0 : index
    %c0_15 = arith.constant 0 : index
    %32 = vector.load %arg6[%c0_14, %c0_15] : memref<16x128xf32, #tpu.memory_space<vmem>>, vector<16x128xf32>
    %cst_16 = arith.constant dense<0.000000e+00> : vector<128x128xf32>
    %33 = tpu.matmul %31, %32, %cst_16 {dimension_numbers = #tpu.dot_dimension_numbers<[1], [0], [0], [1], [0, 0, 1, 1], [], []>} : vector<128x16xf32>, vector<16x128xf32>, vector<128x128xf32> -> vector<128x128xf32>
    %c0_17 = arith.constant 0 : index
    %c0_18 = arith.constant 0 : index
    %34 = vector.load %arg7[%c0_17, %c0_18] : memref<1x128xf32, #tpu.memory_space<vmem>>, vector<1x128xf32>
    %35 = vector.broadcast %34 : vector<1x128xf32> to vector<128x128xf32>
    %36 = arith.addf %33, %35 : vector<128x128xf32>
    %37 = arith.addf %29, %36 : vector<128x128xf32>
    %cst_19 = arith.constant 0.000000e+00 : f32
    %38 = vector.broadcast %cst_19 : f32 to vector<128x128xf32>
    %39 = arith.maximumf %37, %38 : vector<128x128xf32>
    %40 = vector.shape_cast %39 : vector<128x128xf32> to vector<2x64x128xf32>
    %c0_20 = arith.constant 0 : index
    %c0_21 = arith.constant 0 : index
    %c0_22 = arith.constant 0 : index
    %41 = vector.load %arg8[%c0_20, %c0_21, %c0_22] : memref<2x64x128xf32, #tpu.memory_space<vmem>>, vector<2x64x128xf32>
    tpu.vector_store %arg8[%c0_20, %c0_21, %c0_22], %40 {strides = array<i32>} : memref<2x64x128xf32, #tpu.memory_space<vmem>>, vector<2x64x128xf32>,
    return
  }
  func.func @transform_0(%arg0: i32) -> (i32, i32, i32) {
    %c0_i32 = arith.constant 0 : i32
    %c0_i32_0 = arith.constant 0 : i32
    %c0_i32_1 = arith.constant 0 : i32
    return %arg0, %c0_i32, %c0_i32_0 : i32, i32, i32
  }
  func.func @transform_1(%arg0: i32) -> (i32, i32) {
    %c0_i32 = arith.constant 0 : i32
    %c0_i32_0 = arith.constant 0 : i32
    %c0_i32_1 = arith.constant 0 : i32
    return %c0_i32, %c0_i32_0 : i32, i32
  }
  func.func @transform_2(%arg0: i32) -> (i32, i32) {
    %c0_i32 = arith.constant 0 : i32
    %c0_i32_0 = arith.constant 0 : i32
    %c0_i32_1 = arith.constant 0 : i32
    return %c0_i32, %c0_i32_0 : i32, i32
  }
  func.func @transform_3(%arg0: i32) -> (i32, i32) {
    %c0_i32 = arith.constant 0 : i32
    %c0_i32_0 = arith.constant 0 : i32
    %c0_i32_1 = arith.constant 0 : i32
    return %c0_i32, %c0_i32_0 : i32, i32
  }
  func.func @transform_4(%arg0: i32) -> (i32, i32) {
    %c0_i32 = arith.constant 0 : i32
    %c0_i32_0 = arith.constant 0 : i32
    %c0_i32_1 = arith.constant 0 : i32
    return %c0_i32, %c0_i32_0 : i32, i32
  }
  func.func @transform_5(%arg0: i32) -> (i32, i32) {
    %c0_i32 = arith.constant 0 : i32
    %c0_i32_0 = arith.constant 0 : i32
    %c0_i32_1 = arith.constant 0 : i32
    return %c0_i32, %c0_i32_0 : i32, i32
  }
  func.func @transform_6(%arg0: i32) -> (i32, i32) {
    %c0_i32 = arith.constant 0 : i32
    %c0_i32_0 = arith.constant 0 : i32
    %c0_i32_1 = arith.constant 0 : i32
    return %c0_i32, %c0_i32_0 : i32, i32
  }
  func.func @transform_7(%arg0: i32) -> (i32, i32, i32) {
    %c0_i32 = arith.constant 0 : i32
    %c0_i32_0 = arith.constant 0 : i32
    %c0_i32_1 = arith.constant 0 : i32
    return %arg0, %c0_i32, %c0_i32_0 : i32, i32, i32
  }
}

</mosaic_0001>

<bundles_post_ra>
// kernel: tpu_custom_call.1
= control target key start
LH: loop header
LB: loop body
LE: loop exit
PB: predicated region body
PF: predicated region fallthrough
CT: control target
= control target key end

     0   :  { %vm146_vm0 = vcmask 1043456   ;;  %vm63_vm1 = vcmask 1045504   ;;  %s1822_s30 = smov 32   ;;  %s1823_s8 = smov 16   ;;  %vm229_vm2 = vcmask 1041408   ;;  %s2663_s0 = inlined_call_operand.vmem [shape: f32[2,70,16], index: 0, kind: input, shape index: {}]   ;;  %s2664_s1 = inlined_call_operand.vmem [shape: f32[64,32], index: 1, kind: input, shape index: {}]   ;;  %s2665_s2 = inlined_call_operand.vmem [shape: f32[1,32], index: 2, kind: input, shape index: {}]   ;;  %s2666_s3 = inlined_call_operand.vmem [shape: f32[128,128], index: 3, kind: input, shape index: {}]   ;;  %s2667_s4 = inlined_call_operand.vmem [shape: f32[1,128], index: 4, kind: input, shape index: {}]   ;;  %s2668_s5 = inlined_call_operand.vmem [shape: f32[16,128], index: 5, kind: input, shape index: {}]   ;;  %s2669_s6 = inlined_call_operand.vmem [shape: f32[1,128], index: 6, kind: input, shape index: {}]   ;;  %s2670_s7 = inlined_call_operand.hbm [shape: f32[2,64,128], index: 7, kind: output, shape index: {}]  }
   0x1   :  { %v1873_v0 = vld [vmem:[%s2663_s0] sm:$0xff]  ;;  %v1878_v1 = vld [vmem:[%s2663_s0 + $0x8] sm:$0xff]  ;;  %v1887_v6 = vld [vmem:[%s2663_s0 + $0x10] sm:$0xff] }
   0x2   :  { %v147_v2 = vrot.slane %v1873_v0, 4  ;;  %v148_v3 = vrot.slane %v1878_v1, 4  ;;  %v64_v4 = vrot.slane %v1873_v0, 2  ;;  %v65_v5 = vrot.slane %v1878_v1, 2  ;;  %v1903_v16 = vld [vmem:[%s2663_s0 + $0x18] sm:$0xff]  ;;  %v1908_v17 = vld [vmem:[%s2663_s0 + $0x20] sm:$0xff] }
   0x3   :  { %v150_v7 = vrot.slane %v1887_v6, 4  ;;  %v67_v8 = vrot.slane %v1887_v6, 2  ;;  %v231_v11 = vrot.slane %v1878_v1, 6  ;;  %v233_v14 = vrot.slane %v1887_v6, 6 }
   0x4   :  { %v149_v9 = vsel %vm146_vm0, %v147_v2, %v148_v3  ;;  %v66_v10 = vsel %vm63_vm1, %v64_v4, %v65_v5  ;;  %v230_v15 = vrot.slane %v1873_v0, 6  ;;  %v69_v20 = vrot.slane %v1903_v16, 2 }
   0x5   :  { %181 = vrot.lane.b32.xlu1 %v149_v9, %s1822_s30  ;;  %98 = vrot.lane.b32.xlu0 %v66_v10, %s1823_s8  ;;  %v151_v12 = vsel %vm146_vm0, %v148_v3, %v150_v7  ;;  %v68_v13 = vsel %vm63_vm1, %v65_v5, %v67_v8  ;;  %v1913_v18 = vsel %vm229_vm2, %v231_v11, %v233_v14  ;;  %v71_v21 = vrot.slane %v1908_v17, 2 }
   0x6   :  { %v1916_v19 = vsel %vm229_vm2, %v230_v15, %v231_v11 }
   0x9   :  { %183 = vrot.lane.b32.xlu1 %v151_v12, %s1822_s30  ;;  %100 = vrot.lane.b32.xlu0 %v68_v13, %s1823_s8 }
   0xa   :  { %12 = vsyncpa [#allocation3], 0  ;;  %s1824_s13 = smov 48   ;;  %v72_v22 = vsel %vm63_vm1, %v69_v20, %v71_v21  ;;  %v70_v23 = vsel %vm63_vm1, %v67_v8, %v69_v20  ;;  %v152_v24 = vrot.slane %v1903_v16, 4  ;;  %v154_v25 = vrot.slane %v1908_v17, 4  ;;  %v1937_v30 = vld [vmem:[%s2663_s0 + $0x28] sm:$0xff] }
   0xb   :  { %v235_v28 = vrot.slane %v1903_v16, 6  ;;  %v237_v29 = vrot.slane %v1908_v17, 6  ;;  %v1942_v31 = vld [vmem:[%s2663_s0 + $0x30] sm:$0xff]  ;;  %v73_v34 = vrot.slane %v1937_v30, 2  ;;  %v363_v36 = vld [vmem:[%s2664_s1] sm:$0xff]  ;;  %v364_v37 = vld [vmem:[%s2664_s1 + $0x8] sm:$0xff] }
   0xc   :  { %v155_v26 = vsel %vm146_vm0, %v152_v24, %v154_v25  ;;  %v153_v27 = vsel %vm146_vm0, %v150_v7, %v152_v24  ;;  %v75_v35 = vrot.slane %v1942_v31, 2  ;;  %v365_v38 = vld [vmem:[%s2664_s1 + $0x10] sm:$0xff]  ;;  %v366_v39 = vld [vmem:[%s2664_s1 + $0x18] sm:$0xff]  ;;  %v156_v40 = vrot.slane %v1937_v30, 4  ;;  %v367_v46 = vld [vmem:[%s2664_s1 + $0x20] sm:$0xff] }
   0xd   :  { %266 = vrot.lane.b32.xlu1 %v1913_v18, %s1824_s13  ;;  %264 = vrot.lane.b32.xlu0 %v1916_v19, %s1824_s13  ;;  %v1947_v32 = vsel %vm229_vm2, %v235_v28, %v237_v29  ;;  %v1950_v33 = vsel %vm229_vm2, %v233_v14, %v235_v28  ;;  %v74_v42 = vsel %vm63_vm1, %v71_v21, %v73_v34  ;;  %v158_v43 = vrot.slane %v1942_v31, 4  ;;  %v368_v47 = vld [vmem:[%s2664_s1 + $0x28] sm:$0xff]  ;;  %v1989_v52 = vld [vmem:[%s2663_s0 + $0x38] sm:$0xff] }
   0xe   :  { %v76_v41 = vsel %vm63_vm1, %v73_v34, %v75_v35  ;;  %v1616_v44 = vpack.c.bf16 %v364_v37, %v363_v36  ;;  %v1620_v45 = vpack.c.bf16 %v366_v39, %v365_v38  ;;  %v157_v49 = vsel %vm146_vm0, %v154_v25, %v156_v40  ;;  %v35_v53 = vld [vmem:[%s2663_s0 + $0x40] sm:$0x3f]  ;;  %v369_v55 = vld [vmem:[%s2664_s1 + $0x30] sm:$0xff]  ;;  %v370_v56 = vld [vmem:[%s2664_s1 + $0x38] sm:$0xff] }
   0xf   :  { %v159_v48 = vsel %vm146_vm0, %v156_v40, %v158_v43  ;;  %v239_v50 = vrot.slane %v1937_v30, 6  ;;  %v241_v51 = vrot.slane %v1942_v31, 6  ;;  %v1624_v54 = vpack.c.bf16 %v368_v47, %v367_v46  ;;  %v2024_v9 = vld [vmem:[%s2663_s0 + $0x50] sm:$0xff]  ;;  %v2029_v10 = vld [vmem:[%s2663_s0 + $0x58] sm:$0xff]  ;;  %v2034_v11 = vld [vmem:[%s2663_s0 + $0x48] sm:$0xff] }
  0x10   :  { %1617 = vmatprep.subr.bf16.mxu0 %v1616_v44  ;;  %v77_v59 = vrot.slane %v1989_v52, 2  ;;  %v79_v60 = vrot.slane %v35_v53, 2  ;;  %v1628_v61 = vpack.c.bf16 %v370_v56, %v369_v55  ;;  %v160_v2 = vrot.slane %v1989_v52, 4  ;;  %v2071_v36 = vld [vmem:[%s2663_s0 + $0x68] sm:$0xff] }
  0x11   :  { %104 = vrot.lane.b32.xlu1 %v72_v22, %s1823_s8  ;;  %102 = vrot.lane.b32.xlu0 %v70_v23, %s1823_s8  ;;  %v2003_v57 = vsel %vm229_vm2, %v239_v50, %v241_v51  ;;  %v2006_v58 = vsel %vm229_vm2, %v237_v29, %v239_v50  ;;  %v162_v3 = vrot.slane %v35_v53, 4  ;;  %v243_v7 = vrot.slane %v1989_v52, 6  ;;  %v2105_v50 = vld [vmem:[%s2663_s0 + $0x78] sm:$0xff] }
  0x12   :  { %1619 = vmatpush3.bf16.msra.mxu0 %v1616_v44  ;;  %v80_v62 = vsel %vm63_vm1, %v77_v59, %v79_v60  ;;  %v78_v63 = vsel %vm63_vm1, %v75_v35, %v77_v59  ;;  %v161_v5 = vsel %vm146_vm0, %v158_v43, %v160_v2  ;;  %v245_v8 = vrot.slane %v35_v53, 6  ;;  %v2066_v35 = vld [vmem:[%s2663_s0 + $0x60] sm:$0xff] }
  0x13   :  { %1621 = vmatprep.subr.bf16.mxu0 %v1620_v45  ;;  %v163_v4 = vsel %vm146_vm0, %v160_v2, %v162_v3  ;;  %v82_v12 = vrot.slane %v2024_v9, 2  ;;  %v2043_v14 = vsel %vm229_vm2, %v241_v51, %v243_v7  ;;  %v84_v15 = vrot.slane %v2029_v10, 2 }
  0x14   :  { %v2040_v13 = vsel %vm229_vm2, %v243_v7, %v245_v8  ;;  %v81_v20 = vrot.slane %v2034_v11, 2  ;;  %v165_v21 = vrot.slane %v2024_v9, 4  ;;  %v167_v24 = vrot.slane %v2029_v10, 4 }
  0x15   :  { %187 = vrot.lane.b32.xlu1 %v155_v26, %s1822_s30  ;;  %185 = vrot.lane.b32.xlu0 %v153_v27, %s1822_s30  ;;  %v85_v22 = vsel %vm63_vm1, %v82_v12, %v84_v15  ;;  %v164_v25 = vrot.slane %v2034_v11, 4  ;;  %v248_v26 = vrot.slane %v2024_v9, 6  ;;  %v250_v29 = vrot.slane %v2029_v10, 6 }
  0x16   :  { %1623 = vmatpush3.bf16.msra.mxu0 %v1620_v45  ;;  %v83_v23 = vsel %vm63_vm1, %v81_v20, %v82_v12  ;;  %v168_v27 = vsel %vm146_vm0, %v165_v21, %v167_v24  ;;  %v247_v34 = vrot.slane %v2034_v11, 6  ;;  %v86_v39 = vrot.slane %v2066_v35, 2 }
  0x17   :  { %1625 = vmatprep.subr.bf16.mxu0 %v1624_v54  ;;  %v166_v28 = vsel %vm146_vm0, %v164_v25, %v165_v21  ;;  %v2076_v37 = vsel %vm229_vm2, %v248_v26, %v250_v29  ;;  %v88_v40 = vrot.slane %v2071_v36, 2  ;;  %v169_v43 = vrot.slane %v2066_v35, 4 }
  0x18   :  { %v2079_v38 = vsel %vm229_vm2, %v247_v34, %v248_v26  ;;  %v171_v44 = vrot.slane %v2071_v36, 4  ;;  %v252_v47 = vrot.slane %v2066_v35, 6  ;;  %v92_v55 = vrot.slane %v2105_v50, 2 }
  0x19   :  { %270 = vrot.lane.b32.xlu1 %v1947_v32, %s1824_s13  ;;  %268 = vrot.lane.b32.xlu0 %v1950_v33, %s1824_s13  ;;  %v170_v46 = vsel %vm146_vm0, %v167_v24, %v169_v43  ;;  %v258_v3 = vrot.slane %v2105_v50, 6  ;;  %vm312_vm3 = vcmask 130048   ;;  %vm329_vm4 = vcmask 261120  }
  0x1a   :  { %1627 = vmatpush3.bf16.msra.mxu0 %v1624_v54  ;;  %v172_v45 = vsel %vm146_vm0, %v169_v43, %v171_v44  ;;  %v2113_v53 = vsel %vm229_vm2, %v250_v29, %v252_v47  ;;  %vm346_vm5 = vcmask 392192   ;;  %vm378_vm6 = vcmask 523264  }
  0x1b   :  { %1629 = vmatprep.subr.bf16.mxu0 %v1628_v61  ;;  %vm932_vm7 = vcmask 785408  }
  0x1d   :  { %108 = vrot.lane.b32.xlu1 %v76_v41, %s1823_s8  ;;  %106 = vrot.lane.b32.xlu0 %v74_v42, %s1823_s8  ;;  %v89_v41 = vsel %vm63_vm1, %v86_v39, %v88_v40  ;;  %v87_v42 = vsel %vm63_vm1, %v84_v15, %v86_v39 }
  0x1e   :  { %1631 = vmatpush3.bf16.msra.mxu0 %v1628_v61  ;;  %v175_v61 = vrot.slane %v2105_v50, 4 }
  0x21   :  { %191 = vrot.lane.b32.xlu1 %v159_v48, %s1822_s30  ;;  %189 = vrot.lane.b32.xlu0 %v157_v49, %s1822_s30  ;;  %v254_v48 = vrot.slane %v2071_v36, 6  ;;  %v2100_v49 = vld [vmem:[%s2663_s0 + $0x70] sm:$0xff] }
  0x22   :  { %v90_v54 = vrot.slane %v2100_v49, 2  ;;  %v173_v60 = vrot.slane %v2100_v49, 4  ;;  %v256_v2 = vrot.slane %v2100_v49, 6 }
  0x23   :  { %v2110_v51 = vsel %vm229_vm2, %v252_v47, %v254_v48 }
  0x24   :  { %v93_v56 = vsel %vm63_vm1, %v90_v54, %v92_v55  ;;  %v91_v59 = vsel %vm63_vm1, %v88_v40, %v90_v54  ;;  %v2142_v7 = vsel %vm229_vm2, %v256_v2, %v258_v3  ;;  %v2145_v8 = vsel %vm229_vm2, %v254_v48, %v256_v2 }
  0x25   :  { %274 = vrot.lane.b32.xlu1 %v2003_v57, %s1824_s13  ;;  %272 = vrot.lane.b32.xlu0 %v2006_v58, %s1824_s13 }
  0x29   :  { %112 = vrot.lane.b32.xlu1 %v80_v62, %s1823_s8  ;;  %110 = vrot.lane.b32.xlu0 %v78_v63, %s1823_s8  ;;  %v176_v62 = vsel %vm146_vm0, %v173_v60, %v175_v61  ;;  %v174_v63 = vsel %vm146_vm0, %v171_v44, %v173_v60 }
  0x2d   :  { %195 = vrot.lane.b32.xlu1 %v163_v4, %s1822_s30  ;;  %193 = vrot.lane.b32.xlu0 %v161_v5, %s1822_s30  ;;  %v2134_v4 = vld [vmem:[%s2663_s0 + $0x80] sm:$0xff]  ;;  %v44_v5 = vld [vmem:[%s2663_s0 + $0x88] sm:$0x3f] }
  0x2e   :  { %v94_v12 = vrot.slane %v2134_v4, 2  ;;  %v96_v15 = vrot.slane %v44_v5, 2  ;;  %v260_v26 = vrot.slane %v2134_v4, 6 }
  0x30   :  { %v97_v20 = vsel %vm63_vm1, %v94_v12, %v96_v15  ;;  %v95_v21 = vsel %vm63_vm1, %v92_v55, %v94_v12  ;;  %v2166_v29 = vsel %vm229_vm2, %v258_v3, %v260_v26 }
  0x31   :  { %278 = vrot.lane.b32.xlu1 %v2040_v13, %s1824_s13  ;;  %276 = vrot.lane.b32.xlu0 %v2043_v14, %s1824_s13 }
  0x35   :  { %116 = vrot.lane.b32.xlu1 %v85_v22, %s1823_s8  ;;  %114 = vrot.lane.b32.xlu0 %v83_v23, %s1823_s8  ;;  %v177_v22 = vrot.slane %v2134_v4, 4  ;;  %v179_v23 = vrot.slane %v44_v5, 4 }
  0x37   :  { %v180_v24 = vsel %vm146_vm0, %v177_v22, %v179_v23  ;;  %v178_v25 = vsel %vm146_vm0, %v175_v61, %v177_v22 }
  0x39   :  { %199 = vrot.lane.b32.xlu1 %v168_v27, %s1822_s30  ;;  %197 = vrot.lane.b32.xlu0 %v166_v28, %s1822_s30  ;;  %v262_v27 = vrot.slane %v44_v5, 6 }
  0x3b   :  { %v2163_v28 = vsel %vm229_vm2, %v260_v26, %v262_v27 }
  0x3d   :  { %282 = vrot.lane.b32.xlu1 %v2076_v37, %s1824_s13  ;;  %280 = vrot.lane.b32.xlu0 %v2079_v38, %s1824_s13 }
  0x41   :  { %120 = vrot.lane.b32.xlu1 %v89_v41, %s1823_s8  ;;  %118 = vrot.lane.b32.xlu0 %v87_v42, %s1823_s8 }
  0x45   :  { %203 = vrot.lane.b32.xlu1 %v172_v45, %s1822_s30  ;;  %201 = vrot.lane.b32.xlu0 %v170_v46, %s1822_s30 }
  0x49   :  { %286 = vrot.lane.b32.xlu1 %v2110_v51, %s1824_s13  ;;  %284 = vrot.lane.b32.xlu0 %v2113_v53, %s1824_s13 }
  0x4d   :  { %124 = vrot.lane.b32.xlu1 %v93_v56, %s1823_s8  ;;  %122 = vrot.lane.b32.xlu0 %v91_v59, %s1823_s8 }
  0x51   :  { %207 = vrot.lane.b32.xlu1 %v176_v62, %s1822_s30  ;;  %205 = vrot.lane.b32.xlu0 %v174_v63, %s1822_s30 }
  0x55   :  { %290 = vrot.lane.b32.xlu1 %v2142_v7, %s1824_s13  ;;  %288 = vrot.lane.b32.xlu0 %v2145_v8, %s1824_s13 }
  0x59   :  { %128 = vrot.lane.b32.xlu1 %v97_v20, %s1823_s8  ;;  %126 = vrot.lane.b32.xlu0 %v95_v21, %s1823_s8 }
  0x5d   :  { %211 = vrot.lane.b32.xlu1 %v180_v24, %s1822_s30  ;;  %209 = vrot.lane.b32.xlu0 %v178_v25, %s1822_s30 }
  0x61   :  { %294 = vrot.lane.b32.xlu1 %v2163_v28, %s1824_s13  ;;  %292 = vrot.lane.b32.xlu0 %v2166_v29, %s1824_s13 }
  0x77   :  { %v182_v34 = vpop.permute.xlu1 %181  ;;  %v99_v39 = vpop.permute.xlu0 %98 }
  0x78   :  { %v313_v42 = vsel %vm312_vm3, %v1873_v0, %v99_v39 }
  0x79   :  { %v330_v47 = vsel %vm329_vm4, %v313_v42, %v182_v34 }
  0x7b   :  { %v184_v40 = vpop.permute.xlu1 %183  ;;  %v101_v41 = vpop.permute.xlu0 %100 }
  0x7c   :  { %v314_v43 = vsel %vm312_vm3, %v1878_v1, %v101_v41 }
  0x7d   :  { %v331_v45 = vsel %vm329_vm4, %v314_v43, %v184_v40 }
  0x7f   :  { %v267_v44 = vpop.permute.xlu1 %266  ;;  %v265_v46 = vpop.permute.xlu0 %264 }
  0x80   :  { %v348_v48 = vsel %vm346_vm5, %v331_v45, %v267_v44  ;;  %v347_v54 = vsel %vm346_vm5, %v330_v47, %v265_v46 }
  0x81   :  { %1508 = vmatprep.mubr.msk.f32.mxu0 %vm378_vm6, %v347_v54 }
  0x82   :  { %1509 = vmatmul.mubr.msk.f32.vlgmr.msra.gmra.mrb[0].mxu0 %vm378_vm6, %v348_v48 }
  0x83   :  { %v105_v0 = vpop.permute.xlu1 %104  ;;  %v103_v55 = vpop.permute.xlu0 %102 }
  0x84   :  { %v316_v59 = vsel %vm312_vm3, %v1903_v16, %v105_v0  ;;  %v315_v60 = vsel %vm312_vm3, %v1887_v6, %v103_v55 }
  0x87   :  { %v188_v1 = vpop.permute.xlu1 %187  ;;  %v186_v56 = vpop.permute.xlu0 %185 }
  0x88   :  { %v333_v61 = vsel %vm329_vm4, %v316_v59, %v188_v1  ;;  %v332_v62 = vsel %vm329_vm4, %v315_v60, %v186_v56 }
  0x8b   :  { %v271_v63 = vpop.permute.xlu1 %270  ;;  %v269_v2 = vpop.permute.xlu0 %268 }
  0x8c   :  { %v350_v3 = vsel %vm346_vm5, %v333_v61, %v271_v63  ;;  %v349_v5 = vsel %vm346_vm5, %v332_v62, %v269_v2 }
  0x8d   :  { %1511 = vmatprep.mubr.msk.f32.mxu0 %vm378_vm6, %v349_v5 }
  0x8e   :  { %1512 = vmatmul.mubr.msk.f32.gmra.mrb[2].mxu0 %vm378_vm6, %v350_v3 }
  0x8f   :  { %v109_v12 = vpop.permute.xlu1 %108  ;;  %v107_v15 = vpop.permute.xlu0 %106 }
  0x90   :  { %v318_v6 = vsel %vm312_vm3, %v1937_v30, %v109_v12  ;;  %v317_v21 = vsel %vm312_vm3, %v1908_v17, %v107_v15 }
  0x93   :  { %v192_v16 = vpop.permute.xlu1 %191  ;;  %v190_v20 = vpop.permute.xlu0 %189 }
  0x94   :  { %v335_v22 = vsel %vm329_vm4, %v318_v6, %v192_v16  ;;  %v334_v23 = vsel %vm329_vm4, %v317_v21, %v190_v20 }
  0x97   :  { %v275_v24 = vpop.permute.xlu1 %274  ;;  %v273_v25 = vpop.permute.xlu0 %272 }
  0x98   :  { %v352_v26 = vsel %vm346_vm5, %v335_v22, %v275_v24  ;;  %v351_v27 = vsel %vm346_vm5, %v334_v23, %v273_v25 }
  0x99   :  { %1514 = vmatprep.mubr.msk.f32.mxu0 %vm378_vm6, %v351_v27 }
  0x9a   :  { %1515 = vmatmul.mubr.msk.f32.gmra.mrb[4].mxu0 %vm378_vm6, %v352_v26 }
  0x9b   :  { %v113_v34 = vpop.permute.xlu1 %112  ;;  %v111_v39 = vpop.permute.xlu0 %110 }
  0x9c   :  { %v320_v17 = vsel %vm312_vm3, %v1989_v52, %v113_v34  ;;  %v319_v41 = vsel %vm312_vm3, %v1942_v31, %v111_v39 }
  0x9f   :  { %v196_v30 = vpop.permute.xlu1 %195  ;;  %v194_v40 = vpop.permute.xlu0 %193 }
  0xa0   :  { %v337_v42 = vsel %vm329_vm4, %v320_v17, %v196_v30  ;;  %v336_v43 = vsel %vm329_vm4, %v319_v41, %v194_v40 }
  0xa3   :  { %v279_v44 = vpop.permute.xlu1 %278  ;;  %v277_v45 = vpop.permute.xlu0 %276 }
  0xa4   :  { %v354_v46 = vsel %vm346_vm5, %v337_v42, %v279_v44  ;;  %v353_v47 = vsel %vm346_vm5, %v336_v43, %v277_v45 }
  0xa5   :  { %1517 = vmatprep.mubr.msk.f32.mxu0 %vm378_vm6, %v353_v47 }
  0xa6   :  { %1518 = vmatmul.mubr.msk.f32.gmra.mrb[6].mxu0 %vm378_vm6, %v354_v46 }
  0xa7   :  { %v117_v48 = vpop.permute.xlu1 %116  ;;  %v115_v54 = vpop.permute.xlu0 %114 }
  0xa8   :  { %v322_v31 = vsel %vm312_vm3, %v2024_v9, %v117_v48  ;;  %v321_v55 = vsel %vm312_vm3, %v2034_v11, %v115_v54 }
  0xab   :  { %v200_v52 = vpop.permute.xlu1 %199  ;;  %v198_v0 = vpop.permute.xlu0 %197 }
  0xac   :  { %v339_v1 = vsel %vm329_vm4, %v322_v31, %v200_v52  ;;  %v338_v56 = vsel %vm329_vm4, %v321_v55, %v198_v0  ;;  %v951_v52 = vld [vmem:[%s2666_s3 + $0x10] sm:$0xff]  ;;  %v952_v31 = vld [vmem:[%s2666_s3 + $0x18] sm:$0xff] }
  0xad   :  { %v1636_v55 = vpack.c.bf16 %v952_v31, %v951_v52 }
  0xaf   :  { %v283_v59 = vpop.permute.xlu1 %282  ;;  %v281_v60 = vpop.permute.xlu0 %280 }
  0xb0   :  { %v356_v61 = vsel %vm346_vm5, %v339_v1, %v283_v59  ;;  %v355_v62 = vsel %vm346_vm5, %v338_v56, %v281_v60  ;;  %v954_v1 = vld [vmem:[%s2666_s3 + $0x28] sm:$0xff]  ;;  %v955_v59 = vld [vmem:[%s2666_s3 + $0x30] sm:$0xff]  ;;  %v956_v60 = vld [vmem:[%s2666_s3 + $0x38] sm:$0xff] }
  0xb1   :  { %1520 = vmatprep.mubr.msk.f32.mxu0 %vm378_vm6, %v355_v62  ;;  %v957_v62 = vld [vmem:[%s2666_s3 + $0x40] sm:$0xff] }
  0xb2   :  { %1521 = vmatmul.mubr.msk.f32.gmra.mrb[8].mxu0 %vm378_vm6, %v356_v61  ;;  %v1644_v61 = vpack.c.bf16 %v956_v60, %v955_v59 }
  0xb3   :  { %v121_v63 = vpop.permute.xlu1 %120  ;;  %v119_v2 = vpop.permute.xlu0 %118 }
  0xb4   :  { %v324_v11 = vsel %vm312_vm3, %v2066_v35, %v121_v63  ;;  %v323_v5 = vsel %vm312_vm3, %v2029_v10, %v119_v2  ;;  %v958_v63 = vld [vmem:[%s2666_s3 + $0x48] sm:$0xff] }
  0xb5   :  { %v1648_v2 = vpack.c.bf16 %v958_v63, %v957_v62 }
  0xb7   :  { %v204_v9 = vpop.permute.xlu1 %203  ;;  %v202_v3 = vpop.permute.xlu0 %201 }
  0xb8   :  { %v341_v12 = vsel %vm329_vm4, %v324_v11, %v204_v9  ;;  %v340_v15 = vsel %vm329_vm4, %v323_v5, %v202_v3  ;;  %v959_v9 = vld [vmem:[%s2666_s3 + $0x50] sm:$0xff]  ;;  %v960_v3 = vld [vmem:[%s2666_s3 + $0x58] sm:$0xff]  ;;  %v2293_v5 = vld [vmem:[%s2665_s2] ss:$0 sm:$0xff] }
  0xb9   :  { %v1652_v11 = vpack.c.bf16 %v960_v3, %v959_v9 }
  0xbb   :  { %v287_v16 = vpop.permute.xlu1 %286  ;;  %v285_v20 = vpop.permute.xlu0 %284 }
  0xbc   :  { %v358_v6 = vsel %vm346_vm5, %v341_v12, %v287_v16  ;;  %v357_v21 = vsel %vm346_vm5, %v340_v15, %v285_v20 }
  0xbd   :  { %1523 = vmatprep.mubr.msk.f32.mxu0 %vm378_vm6, %v357_v21 }
  0xbe   :  { %1524 = vmatmul.mubr.msk.f32.gmra.mrb[10].mxu0 %vm378_vm6, %v358_v6 }
  0xbf   :  { %v125_v22 = vpop.permute.xlu1 %124  ;;  %v123_v23 = vpop.permute.xlu0 %122 }
  0xc0   :  { %v326_v10 = vsel %vm312_vm3, %v2100_v49, %v125_v22  ;;  %v325_v25 = vsel %vm312_vm3, %v2071_v36, %v123_v23 }
  0xc3   :  { %v208_v35 = vpop.permute.xlu1 %207  ;;  %v206_v24 = vpop.permute.xlu0 %205 }
  0xc4   :  { %v343_v26 = vsel %vm329_vm4, %v326_v10, %v208_v35  ;;  %v342_v27 = vsel %vm329_vm4, %v325_v25, %v206_v24 }
  0xc7   :  { %v291_v34 = vpop.permute.xlu1 %290  ;;  %v289_v39 = vpop.permute.xlu0 %288 }
  0xc8   :  { %v360_v30 = vsel %vm346_vm5, %v343_v26, %v291_v34  ;;  %v359_v40 = vsel %vm346_vm5, %v342_v27, %v289_v39  ;;  %v961_v26 = vld [vmem:[%s2666_s3 + $0x60] sm:$0xff]  ;;  %v962_v27 = vld [vmem:[%s2666_s3 + $0x68] sm:$0xff] }
  0xc9   :  { %1526 = vmatprep.mubr.msk.f32.mxu0 %vm378_vm6, %v359_v40  ;;  %v1656_v39 = vpack.c.bf16 %v962_v27, %v961_v26 }
  0xca   :  { %1527 = vmatmul.mubr.msk.f32.gmra.mrb[12].mxu0 %vm378_vm6, %v360_v30 }
  0xcb   :  { %v129_v17 = vpop.permute.xlu1 %128  ;;  %v127_v41 = vpop.permute.xlu0 %126 }
  0xcc   :  { %v328_v36 = vsel %vm312_vm3, %v2134_v4, %v129_v17  ;;  %v327_v43 = vsel %vm312_vm3, %v2105_v50, %v127_v41  ;;  %v949_v50 = vld [vmem:[%s2666_s3] sm:$0xff]  ;;  %v950_v4 = vld [vmem:[%s2666_s3 + $0x8] sm:$0xff] }
  0xcd   :  { %v1632_v0 = vpack.c.bf16 %v950_v4, %v949_v50 }
  0xcf   :  { %v212_v49 = vpop.permute.xlu1 %211  ;;  %v210_v42 = vpop.permute.xlu0 %209  ;;  %1633 = vmatprep.subr.bf16.mxu1 %v1632_v0 }
  0xd0   :  { %v345_v44 = vsel %vm329_vm4, %v328_v36, %v212_v49  ;;  %v344_v45 = vsel %vm329_vm4, %v327_v43, %v210_v42  ;;  %1635 = vmatpush3.bf16.msra.mxu1 %v1632_v0  ;;  %v963_v49 = vld [vmem:[%s2666_s3 + $0x70] sm:$0xff]  ;;  %v964_v42 = vld [vmem:[%s2666_s3 + $0x78] sm:$0xff]  ;;  %v1133_v36 = vld [vmem:[%s2668_s5] sm:$0xff] }
  0xd1   :  { %1637 = vmatprep.subr.bf16.mxu1 %v1636_v55 }
  0xd3   :  { %v295_v46 = vpop.permute.xlu1 %294  ;;  %v293_v47 = vpop.permute.xlu0 %292 }
  0xd4   :  { %v362_v48 = vsel %vm346_vm5, %v345_v44, %v295_v46  ;;  %v361_v54 = vsel %vm346_vm5, %v344_v45, %v293_v47  ;;  %1639 = vmatpush3.bf16.msra.mxu1 %v1636_v55  ;;  %v1660_v45 = vpack.c.bf16 %v964_v42, %v963_v49  ;;  %v1134_v46 = vld [vmem:[%s2668_s5 + $0x8] sm:$0xff]  ;;  %s1826_s5 = smov 96  }
  0xd5   :  { %1529 = vmatprep.mubr.msk.f32.mxu0 %vm378_vm6, %v361_v54  ;;  %v2327_v50 = vpack.c.bf16 %v1134_v46, %v1133_v36 }
  0xd6   :  { %1530 = vmatmul.mubr.msk.f32.gmra.mrb[14].mxu0 %vm378_vm6, %v362_v48 }
  0xd7   :  { %1592 = vmatprep.mubr.msk.f32.mxu0 %vm312_vm3, %v1916_v19  ;;  %v953_v19 = vld [vmem:[%s2666_s3 + $0x20] sm:$0xff]  ;;  %1665 = vmatprep.subr.bf16.mxu0 %v2327_v50  ;;  %s1825_s3 = smov 64  }
  0xd8   :  { %v1640_v56 = vpack.c.bf16 %v954_v1, %v953_v19  ;;  %1667 = vmatpush3.bf16.msra.mxu0 %v2327_v50 }
  0xda   :  { %1641 = vmatprep.subr.bf16.mxu1 %v1640_v56 }
  0xdb   :  { %1643 = vmatpush3.bf16.msra.mxu1 %v1640_v56  ;;  %1593 = vmatmul.mubr.msk.f32.vlgmr.msra.gmra.mrb[16].mxu0 %vm312_vm3, %v1913_v18 }
  0xdc   :  { %1645 = vmatprep.subr.bf16.mxu1 %v1644_v61  ;;  %1595 = vmatprep.mubr.msk.f32.mxu0 %vm312_vm3, %v1950_v33 }
  0xdf   :  { %1647 = vmatpush3.bf16.msra.mxu1 %v1644_v61  ;;  %1596 = vmatmul.mubr.msk.f32.gmra.mrb[18].mxu0 %vm312_vm3, %v1947_v32 }
  0xe0   :  { %1649 = vmatprep.subr.bf16.mxu1 %v1648_v2  ;;  %1598 = vmatprep.mubr.msk.f32.mxu0 %vm312_vm3, %v2006_v58 }
  0xe3   :  { %1651 = vmatpush3.bf16.msra.mxu1 %v1648_v2  ;;  %1599 = vmatmul.mubr.msk.f32.gmra.mrb[20].mxu0 %vm312_vm3, %v2003_v57 }
  0xe4   :  { %1653 = vmatprep.subr.bf16.mxu1 %v1652_v11  ;;  %1601 = vmatprep.mubr.msk.f32.mxu0 %vm312_vm3, %v2043_v14 }
  0xe7   :  { %1655 = vmatpush3.bf16.msra.mxu1 %v1652_v11  ;;  %1602 = vmatmul.mubr.msk.f32.gmra.mrb[22].mxu0 %vm312_vm3, %v2040_v13 }
  0xe8   :  { %1657 = vmatprep.subr.bf16.mxu1 %v1656_v39  ;;  %1604 = vmatprep.mubr.msk.f32.mxu0 %vm312_vm3, %v2079_v38 }
  0xeb   :  { %1659 = vmatpush3.bf16.msra.mxu1 %v1656_v39  ;;  %1605 = vmatmul.mubr.msk.f32.gmra.mrb[24].mxu0 %vm312_vm3, %v2076_v37 }
  0xec   :  { %1661 = vmatprep.subr.bf16.mxu1 %v1660_v45  ;;  %1607 = vmatprep.mubr.msk.f32.mxu0 %vm312_vm3, %v2113_v53 }
  0xef   :  { %1663 = vmatpush3.bf16.msra.mxu1 %v1660_v45  ;;  %1608 = vmatmul.mubr.msk.f32.gmra.mrb[26].mxu0 %vm312_vm3, %v2110_v51 }
  0xf0   :  { %1668 = vmatprep.subr.bf16.mxu1 %v2327_v50 }
 0x155   :  { %v1510_v12 = vpop.f32.mrb[0].mxu0 }
 0x156   :  { %v499_v15 = vadd.f32 %v1510_v12, %v2293_v5  ;;  %v493_v16 = vpop.f32.mrb[1].mxu0 }
 0x157   :  { %v494_v20 = vadd.f32 %v2293_v5, %v493_v16 }
 0x158   :  { %v573_v6 = vmax.f32 %v499_v15, 0.0 }
 0x159   :  { %v572_v21 = vmax.f32 %v494_v20, 0.0 }
 0x15a   :  { %v605_v22 = vrot.slane %v573_v6, 2 }
 0x15b   :  { %v604_v23 = vrot.slane %v572_v21, 2 }
 0x15d   :  { %v2298_v35 = vsel %vm63_vm1, %v604_v23, %v605_v22  ;;  %v2309_v30 = vsel %vm63_vm1, 0.0, %v604_v23 }
 0x15e   :  { %v654_v43 = vrot.slane %v2309_v30, 2  ;;  %v736_v47 = vrot.slane %v2309_v30, 4  ;;  %v737_v48 = vrot.slane %v2298_v35, 4  ;;  %v655_v54 = vrot.slane %v2298_v35, 2 }
 0x15f   :  { %v818_v19 = vrot.slane %v2309_v30, 6  ;;  %v819_v1 = vrot.slane %v2298_v35, 6 }
 0x160   :  { %v738_v56 = vsel %vm146_vm0, %v736_v47, %v737_v48  ;;  %v656_v60 = vsel %vm63_vm1, %v654_v43, %v655_v54 }
 0x161   :  { %v1513_v24 = vpop.f32.mrb[2].mxu0  ;;  %v820_v16 = vsel %vm229_vm2, %v818_v19, %v819_v1 }
 0x162   :  { %v509_v10 = vadd.f32 %v1513_v24, %v2293_v5  ;;  %v503_v25 = vpop.f32.mrb[3].mxu0 }
 0x163   :  { %v504_v34 = vadd.f32 %v2293_v5, %v503_v25 }
 0x164   :  { %v575_v40 = vmax.f32 %v509_v10, 0.0 }
 0x165   :  { %v574_v17 = vmax.f32 %v504_v34, 0.0 }
 0x166   :  { %v609_v41 = vrot.slane %v575_v40, 2 }
 0x167   :  { %v607_v44 = vrot.slane %v574_v17, 2 }
 0x169   :  { %v2330_v4 = vsel %vm63_vm1, %v605_v22, %v607_v44  ;;  %v2333_v52 = vsel %vm63_vm1, %v607_v44, %v609_v41 }
 0x16a   :  { %v739_v0 = vrot.slane %v2330_v4, 4  ;;  %v657_v31 = vrot.slane %v2330_v4, 2  ;;  %v821_v55 = vrot.slane %v2330_v4, 6  ;;  %v741_v22 = vrot.slane %v2333_v52, 4 }
 0x16b   :  { %v659_v23 = vrot.slane %v2333_v52, 2  ;;  %v823_v58 = vrot.slane %v2333_v52, 6 }
 0x16c   :  { %v740_v59 = vsel %vm146_vm0, %v737_v48, %v739_v0  ;;  %v658_v61 = vsel %vm63_vm1, %v655_v54, %v657_v31  ;;  %v822_v11 = vsel %vm229_vm2, %v819_v1, %v821_v55  ;;  %v742_v26 = vsel %vm146_vm0, %v739_v0, %v741_v22 }
 0x16d   :  { %v1516_v62 = vpop.f32.mrb[4].mxu0  ;;  %v1683_v63 = vpack.i.bf16 %v740_v59, %v738_v56  ;;  %v1678_v2 = vpack.i.bf16 %v658_v61, %v656_v60  ;;  %v1688_v6 = vpack.i.bf16 %v822_v11, %v820_v16  ;;  %v660_v34 = vsel %vm63_vm1, %v657_v31, %v659_v23 }
 0x16e   :  { %v519_v9 = vadd.f32 %v1516_v62, %v2293_v5  ;;  %v513_v3 = vpop.f32.mrb[5].mxu0  ;;  %v824_v43 = vsel %vm229_vm2, %v821_v55, %v823_v58 }
 0x16f   :  { %v514_v12 = vadd.f32 %v2293_v5, %v513_v3  ;;  %1684 = vrot.lane.b32.xlu1 %v1683_v63, %s1825_s3  ;;  %1679 = vrot.lane.b32.xlu0 %v1678_v2, %s1822_s30 }
 0x170   :  { %v577_v15 = vmax.f32 %v519_v9, 0.0 }
 0x171   :  { %v576_v20 = vmax.f32 %v514_v12, 0.0 }
 0x172   :  { %v613_v21 = vrot.slane %v577_v15, 2 }
 0x173   :  { %v611_v18 = vrot.slane %v576_v20, 2  ;;  %1689 = vrot.lane.b32.xlu0 %v1688_v6, %s1826_s5 }
 0x175   :  { %v2365_v24 = vsel %vm63_vm1, %v609_v41, %v611_v18  ;;  %v2368_v33 = vsel %vm63_vm1, %v611_v18, %v613_v21 }
 0x176   :  { %v743_v10 = vrot.slane %v2365_v24, 4  ;;  %v661_v32 = vrot.slane %v2365_v24, 2  ;;  %v825_v25 = vrot.slane %v2365_v24, 6  ;;  %v745_v13 = vrot.slane %v2368_v33, 4 }
 0x177   :  { %v663_v48 = vrot.slane %v2368_v33, 2  ;;  %v827_v19 = vrot.slane %v2368_v33, 6 }
 0x178   :  { %v744_v27 = vsel %vm146_vm0, %v741_v22, %v743_v10  ;;  %v662_v39 = vsel %vm63_vm1, %v659_v23, %v661_v32  ;;  %v826_v57 = vsel %vm229_vm2, %v823_v58, %v825_v25  ;;  %v746_v53 = vsel %vm146_vm0, %v743_v10, %v745_v13 }
 0x179   :  { %v1519_v40 = vpop.f32.mrb[6].mxu0  ;;  %v1698_v17 = vpack.i.bf16 %v744_v27, %v742_v26  ;;  %v1693_v41 = vpack.i.bf16 %v662_v39, %v660_v34  ;;  %v1703_v45 = vpack.i.bf16 %v826_v57, %v824_v43  ;;  %v664_v56 = vsel %vm63_vm1, %v661_v32, %v663_v48 }
 0x17a   :  { %v529_v49 = vadd.f32 %v1519_v40, %v2293_v5  ;;  %v523_v42 = vpop.f32.mrb[7].mxu0  ;;  %v828_v6 = vsel %vm229_vm2, %v825_v25, %v827_v19 }
 0x17b   :  { %v524_v14 = vadd.f32 %v2293_v5, %v523_v42  ;;  %1699 = vrot.lane.b32.xlu0 %v1698_v17, %s1825_s3  ;;  %1694 = vrot.lane.b32.xlu1 %v1693_v41, %s1822_s30 }
 0x17c   :  { %v579_v36 = vmax.f32 %v529_v49, 0.0 }
 0x17d   :  { %v578_v44 = vmax.f32 %v524_v14, 0.0 }
 0x17e   :  { %v617_v46 = vrot.slane %v579_v36, 2 }
 0x17f   :  { %v615_v47 = vrot.slane %v578_v44, 2  ;;  %1704 = vrot.lane.b32.xlu1 %v1703_v45, %s1826_s5 }
 0x180   :  { %v669_v60 = vrot.slane %v617_v46, 2  ;;  %v751_v18 = vrot.slane %v617_v46, 4 }
 0x181   :  { %v2400_v54 = vsel %vm63_vm1, %v613_v21, %v615_v47  ;;  %v2403_v38 = vsel %vm63_vm1, %v615_v47, %v617_v46  ;;  %v833_v21 = vrot.slane %v617_v46, 6 }
 0x182   :  { %v747_v0 = vrot.slane %v2400_v54, 4  ;;  %v665_v37 = vrot.slane %v2400_v54, 2  ;;  %v667_v31 = vrot.slane %v2403_v38, 2  ;;  %v829_v55 = vrot.slane %v2400_v54, 6 }
 0x183   :  { %v831_v2 = vrot.slane %v2403_v38, 6  ;;  %v749_v9 = vrot.slane %v2403_v38, 4 }
 0x184   :  { %v748_v1 = vsel %vm146_vm0, %v745_v13, %v747_v0  ;;  %v666_v59 = vsel %vm63_vm1, %v663_v48, %v665_v37  ;;  %v668_v11 = vsel %vm63_vm1, %v665_v37, %v667_v31  ;;  %v670_v12 = vsel %vm63_vm1, %v667_v31, %v669_v60 }
 0x185   :  { %v1522_v61 = vpop.f32.mrb[8].mxu0  ;;  %v1713_v62 = vpack.i.bf16 %v748_v1, %v746_v53  ;;  %v1708_v63 = vpack.i.bf16 %v666_v59, %v664_v56  ;;  %v830_v15 = vsel %vm229_vm2, %v827_v19, %v829_v55  ;;  %v1723_v23 = vpack.i.bf16 %v670_v12, %v668_v11 }
 0x186   :  { %v539_v51 = vadd.f32 %v1522_v61, %v2293_v5  ;;  %v533_v3 = vpop.f32.mrb[9].mxu0  ;;  %v1718_v10 = vpack.i.bf16 %v830_v15, %v828_v6  ;;  %v832_v32 = vsel %vm229_vm2, %v829_v55, %v831_v2  ;;  %v834_v26 = vsel %vm229_vm2, %v831_v2, %v833_v21 }
 0x187   :  { %v534_v16 = vadd.f32 %v2293_v5, %v533_v3  ;;  %1714 = vrot.lane.b32.xlu1 %v1713_v62, %s1825_s3  ;;  %1709 = vrot.lane.b32.xlu0 %v1708_v63, %s1822_s30  ;;  %v750_v27 = vsel %vm146_vm0, %v747_v0, %v749_v9  ;;  %v752_v34 = vsel %vm146_vm0, %v749_v9, %v751_v18 }
 0x188   :  { %v581_v20 = vmax.f32 %v539_v51, 0.0  ;;  %v1733_v40 = vpack.i.bf16 %v834_v26, %v832_v32  ;;  %v1728_v17 = vpack.i.bf16 %v752_v34, %v750_v27 }
 0x189   :  { %v580_v22 = vmax.f32 %v534_v16, 0.0 }
 0x18a   :  { %v620_v58 = vrot.slane %v581_v20, 2 }
 0x18b   :  { %v619_v39 = vrot.slane %v580_v22, 2  ;;  %1724 = vrot.lane.b32.xlu1 %v1723_v23, %s1822_s30  ;;  %1719 = vrot.lane.b32.xlu0 %v1718_v10, %s1826_s5 }
 0x18d   :  { %v2433_v25 = vsel %vm63_vm1, %v619_v39, %v620_v58  ;;  %v2440_v36 = vsel %vm63_vm1, 0.0, %v619_v39 }
 0x18e   :  { %v671_v46 = vrot.slane %v2440_v36, 2  ;;  %v753_v47 = vrot.slane %v2440_v36, 4  ;;  %v754_v13 = vrot.slane %v2433_v25, 4  ;;  %v672_v48 = vrot.slane %v2433_v25, 2 }
 0x18f   :  { %1734 = vrot.lane.b32.xlu1 %v1733_v40, %s1826_s5  ;;  %1729 = vrot.lane.b32.xlu0 %v1728_v17, %s1825_s3  ;;  %v835_v19 = vrot.slane %v2440_v36, 6  ;;  %v836_v1 = vrot.slane %v2433_v25, 6 }
 0x190   :  { %v755_v56 = vsel %vm146_vm0, %v753_v47, %v754_v13  ;;  %v673_v60 = vsel %vm63_vm1, %v671_v46, %v672_v48 }
 0x191   :  { %v1525_v41 = vpop.f32.mrb[10].mxu0  ;;  %v837_v15 = vsel %vm229_vm2, %v835_v19, %v836_v1 }
 0x192   :  { %v549_v49 = vadd.f32 %v1525_v41, %v2293_v5  ;;  %v543_v42 = vpop.f32.mrb[11].mxu0 }
 0x193   :  { %v544_v57 = vadd.f32 %v2293_v5, %v543_v42 }
 0x194   :  { %v583_v14 = vmax.f32 %v549_v49, 0.0 }
 0x195   :  { %v582_v43 = vmax.f32 %v544_v57, 0.0 }
 0x196   :  { %v624_v44 = vrot.slane %v583_v14, 2 }
 0x197   :  { %v622_v45 = vrot.slane %v582_v43, 2 }
 0x199   :  { %v2447_v0 = vsel %vm63_vm1, %v620_v58, %v622_v45  ;;  %v2450_v37 = vsel %vm63_vm1, %v622_v45, %v624_v44 }
 0x19a   :  { %v756_v31 = vrot.slane %v2447_v0, 4  ;;  %v674_v55 = vrot.slane %v2447_v0, 2  ;;  %v838_v53 = vrot.slane %v2447_v0, 6  ;;  %v758_v18 = vrot.slane %v2450_v37, 4 }
 0x19b   :  { %v676_v22 = vrot.slane %v2450_v37, 2  ;;  %v840_v27 = vrot.slane %v2450_v37, 6 }
 0x19c   :  { %v757_v59 = vsel %vm146_vm0, %v754_v13, %v756_v31  ;;  %v675_v61 = vsel %vm63_vm1, %v672_v48, %v674_v55  ;;  %v839_v3 = vsel %vm229_vm2, %v836_v1, %v838_v53  ;;  %v759_v34 = vsel %vm146_vm0, %v756_v31, %v758_v18 }
 0x19d   :  { %v1528_v62 = vpop.f32.mrb[12].mxu0  ;;  %v1743_v63 = vpack.i.bf16 %v757_v59, %v755_v56  ;;  %v1738_v2 = vpack.i.bf16 %v675_v61, %v673_v60  ;;  %v1748_v20 = vpack.i.bf16 %v839_v3, %v837_v15  ;;  %v677_v40 = vsel %vm63_vm1, %v674_v55, %v676_v22 }
 0x19e   :  { %v559_v9 = vadd.f32 %v1528_v62, %v2293_v5  ;;  %v553_v51 = vpop.f32.mrb[13].mxu0  ;;  %v841_v46 = vsel %vm229_vm2, %v838_v53, %v840_v27 }
 0x19f   :  { %v554_v11 = vadd.f32 %v2293_v5, %v553_v51  ;;  %1744 = vrot.lane.b32.xlu1 %v1743_v63, %s1825_s3  ;;  %1739 = vrot.lane.b32.xlu0 %v1738_v2, %s1822_s30 }
 0x1a0   :  { %v585_v12 = vmax.f32 %v559_v9, 0.0 }
 0x1a1   :  { %v584_v16 = vmax.f32 %v554_v11, 0.0 }
 0x1a2   :  { %v628_v6 = vrot.slane %v585_v12, 2 }
 0x1a3   :  { %v626_v21 = vrot.slane %v584_v16, 2  ;;  %1749 = vrot.lane.b32.xlu0 %v1748_v20, %s1826_s5 }
 0x1a5   :  { %v2471_v23 = vsel %vm63_vm1, %v624_v44, %v626_v21  ;;  %v2474_v10 = vsel %vm63_vm1, %v626_v21, %v628_v6 }
 0x1a6   :  { %v760_v32 = vrot.slane %v2471_v23, 4  ;;  %v678_v58 = vrot.slane %v2471_v23, 2  ;;  %v842_v26 = vrot.slane %v2471_v23, 6  ;;  %v762_v55 = vrot.slane %v2474_v10, 4 }
 0x1a7   :  { %v680_v19 = vrot.slane %v2474_v10, 2  ;;  %v844_v62 = vrot.slane %v2474_v10, 6 }
 0x1a8   :  { %v761_v39 = vsel %vm146_vm0, %v758_v18, %v760_v32  ;;  %v679_v17 = vsel %vm63_vm1, %v676_v22, %v678_v58  ;;  %v843_v43 = vsel %vm229_vm2, %v840_v27, %v842_v26  ;;  %v763_v61 = vsel %vm146_vm0, %v760_v32, %v762_v55 }
 0x1a9   :  { %v1531_v41 = vpop.f32.mrb[14].mxu0  ;;  %v1758_v49 = vpack.i.bf16 %v761_v39, %v759_v34  ;;  %v1753_v42 = vpack.i.bf16 %v679_v17, %v677_v40  ;;  %v1763_v13 = vpack.i.bf16 %v843_v43, %v841_v46  ;;  %v681_v2 = vsel %vm63_vm1, %v678_v58, %v680_v19 }
 0x1aa   :  { %v569_v57 = vadd.f32 %v1531_v41, %v2293_v5  ;;  %v563_v14 = vpop.f32.mrb[15].mxu0  ;;  %v845_v21 = vsel %vm229_vm2, %v842_v26, %v844_v62 }
 0x1ab   :  { %v564_v44 = vadd.f32 %v2293_v5, %v563_v14  ;;  %1759 = vrot.lane.b32.xlu0 %v1758_v49, %s1825_s3  ;;  %1754 = vrot.lane.b32.xlu1 %v1753_v42, %s1822_s30 }
 0x1ac   :  { %v587_v45 = vmax.f32 %v569_v57, 0.0 }
 0x1ad   :  { %v586_v47 = vmax.f32 %v564_v44, 0.0 }
 0x1ae   :  { %v632_v48 = vrot.slane %v587_v45, 2 }
 0x1af   :  { %v630_v31 = vrot.slane %v586_v47, 2  ;;  %1764 = vrot.lane.b32.xlu1 %v1763_v13, %s1826_s5 }
 0x1b0   :  { %v686_v51 = vrot.slane %v632_v48, 2  ;;  %v850_v18 = vrot.slane %v632_v48, 6  ;;  %v768_v22 = vrot.slane %v632_v48, 4 }
 0x1b1   :  { %v2494_v1 = vsel %vm63_vm1, %v628_v6, %v630_v31  ;;  %v2497_v5 = vsel %vm63_vm1, %v630_v31, %v632_v48 }
 0x1b2   :  { %v764_v56 = vrot.slane %v2494_v1, 4  ;;  %v682_v53 = vrot.slane %v2494_v1, 2  ;;  %v684_v59 = vrot.slane %v2497_v5, 2  ;;  %v846_v60 = vrot.slane %v2494_v1, 6 }
 0x1b3   :  { %v848_v12 = vrot.slane %v2497_v5, 6  ;;  %v766_v6 = vrot.slane %v2497_v5, 4 }
 0x1b4   :  { %v765_v63 = vsel %vm146_vm0, %v762_v55, %v764_v56  ;;  %v683_v9 = vsel %vm63_vm1, %v680_v19, %v682_v53  ;;  %v685_v15 = vsel %vm63_vm1, %v682_v53, %v684_v59  ;;  %v687_v16 = vsel %vm63_vm1, %v684_v59, %v686_v51 }
 0x1b5   :  { %v1773_v3 = vpack.i.bf16 %v765_v63, %v763_v61  ;;  %v1768_v11 = vpack.i.bf16 %v683_v9, %v681_v2  ;;  %v847_v20 = vsel %vm229_vm2, %v844_v62, %v846_v60  ;;  %v1783_v32 = vpack.i.bf16 %v687_v16, %v685_v15 }
 0x1b6   :  { %v1778_v58 = vpack.i.bf16 %v847_v20, %v845_v21  ;;  %v849_v27 = vsel %vm229_vm2, %v846_v60, %v848_v12  ;;  %v851_v34 = vsel %vm229_vm2, %v848_v12, %v850_v18  ;;  %v767_v39 = vsel %vm146_vm0, %v764_v56, %v766_v6 }
 0x1b7   :  { %1774 = vrot.lane.b32.xlu1 %v1773_v3, %s1825_s3  ;;  %1769 = vrot.lane.b32.xlu0 %v1768_v11, %s1822_s30  ;;  %v769_v40 = vsel %vm146_vm0, %v766_v6, %v768_v22  ;;  %v1793_v17 = vpack.i.bf16 %v851_v34, %v849_v27 }
 0x1b8   :  { %v1788_v41 = vpack.i.bf16 %v769_v40, %v767_v39 }
 0x1bb   :  { %1784 = vrot.lane.b32.xlu1 %v1783_v32, %s1822_s30  ;;  %1779 = vrot.lane.b32.xlu0 %v1778_v58, %s1826_s5 }
 0x1bf   :  { %1794 = vrot.lane.b32.xlu1 %v1793_v17, %s1826_s5  ;;  %1789 = vrot.lane.b32.xlu0 %v1788_v41, %s1825_s3 }
 0x1e1   :  { %v1685_v26 = vpop.permute.xlu1 %1684  ;;  %v1680_v49 = vpop.permute.xlu0 %1679 }
 0x1e2   :  { %v1682_v42 = vunpack.i.h.bf16 %v1680_v49  ;;  %v1681_v57 = vunpack.i.l.bf16 %v1680_v49  ;;  %v1687_v14 = vunpack.i.h.bf16 %v1685_v26  ;;  %v1686_v43 = vunpack.i.l.bf16 %v1685_v26 }
 0x1e4   :  { %v900_v44 = vsel %vm329_vm4, %v2309_v30, %v1681_v57  ;;  %v901_v45 = vsel %vm329_vm4, %v2298_v35, %v1682_v42 }
 0x1e5   :  { %v1690_v46 = vpop.permute.xlu0 %1689  ;;  %v916_v48 = vsel %vm378_vm6, %v900_v44, %v1686_v43  ;;  %v917_v31 = vsel %vm378_vm6, %v901_v45, %v1687_v14 }
 0x1e6   :  { %v1692_v47 = vunpack.i.h.bf16 %v1690_v46  ;;  %v1691_v13 = vunpack.i.l.bf16 %v1690_v46 }
 0x1e8   :  { %v933_v55 = vsel %vm932_vm7, %v916_v48, %v1691_v13  ;;  %v934_v19 = vsel %vm932_vm7, %v917_v31, %v1692_v47 }
 0x1e9   :  { %1564 = vmatprep.mubr.f32.mxu1 %v933_v55 }
 0x1ea   :  { %1565 = vmatmul.mubr.f32.vlgmr.msra.gmra.mrb[0].mxu1 %v934_v19 }
 0x1eb   :  { %1669 = vmatpush3.bf16.msra.mxu1 %v2327_v50 }
 0x1ed   :  { %v1695_v30 = vpop.permute.xlu1 %1694  ;;  %v1700_v56 = vpop.permute.xlu0 %1699 }
 0x1ee   :  { %v1697_v53 = vunpack.i.h.bf16 %v1695_v30  ;;  %v1696_v35 = vunpack.i.l.bf16 %v1695_v30  ;;  %v1702_v59 = vunpack.i.h.bf16 %v1700_v56  ;;  %v1701_v60 = vunpack.i.l.bf16 %v1700_v56 }
 0x1f0   :  { %v902_v61 = vsel %vm329_vm4, %v2330_v4, %v1696_v35  ;;  %v903_v62 = vsel %vm329_vm4, %v2333_v52, %v1697_v53 }
 0x1f1   :  { %v1705_v63 = vpop.permute.xlu1 %1704  ;;  %v918_v51 = vsel %vm378_vm6, %v902_v61, %v1701_v60  ;;  %v919_v3 = vsel %vm378_vm6, %v903_v62, %v1702_v59 }
 0x1f2   :  { %v1707_v2 = vunpack.i.h.bf16 %v1705_v63  ;;  %v1706_v9 = vunpack.i.l.bf16 %v1705_v63 }
 0x1f4   :  { %v935_v50 = vsel %vm932_vm7, %v918_v51, %v1706_v9  ;;  %v936_v11 = vsel %vm932_vm7, %v919_v3, %v1707_v2 }
 0x1f5   :  { %1567 = vmatprep.mubr.f32.mxu1 %v935_v50 }
 0x1f6   :  { %1568 = vmatmul.mubr.f32.gmra.mrb[2].mxu1 %v936_v11 }
 0x1f9   :  { %v1715_v12 = vpop.permute.xlu1 %1714  ;;  %v1710_v15 = vpop.permute.xlu0 %1709 }
 0x1fa   :  { %v1712_v16 = vunpack.i.h.bf16 %v1710_v15  ;;  %v1711_v4 = vunpack.i.l.bf16 %v1710_v15  ;;  %v1717_v20 = vunpack.i.h.bf16 %v1715_v12  ;;  %v1716_v6 = vunpack.i.l.bf16 %v1715_v12 }
 0x1fc   :  { %v904_v52 = vsel %vm329_vm4, %v2365_v24, %v1711_v4  ;;  %v905_v21 = vsel %vm329_vm4, %v2368_v33, %v1712_v16 }
 0x1fd   :  { %v1725_v18 = vpop.permute.xlu1 %1724  ;;  %v1720_v22 = vpop.permute.xlu0 %1719  ;;  %v920_v39 = vsel %vm378_vm6, %v904_v52, %v1716_v6  ;;  %v921_v40 = vsel %vm378_vm6, %v905_v21, %v1717_v20 }
 0x1fe   :  { %v1722_v32 = vunpack.i.h.bf16 %v1720_v22  ;;  %v1721_v58 = vunpack.i.l.bf16 %v1720_v22  ;;  %v1727_v27 = vunpack.i.h.bf16 %v1725_v18  ;;  %v1726_v34 = vunpack.i.l.bf16 %v1725_v18 }
 0x200   :  { %v937_v17 = vsel %vm932_vm7, %v920_v39, %v1721_v58  ;;  %v938_v41 = vsel %vm932_vm7, %v921_v40, %v1722_v32  ;;  %v906_v14 = vsel %vm329_vm4, %v2400_v54, %v1726_v34  ;;  %v907_v43 = vsel %vm329_vm4, %v2403_v38, %v1727_v27 }
 0x201   :  { %v1735_v26 = vpop.permute.xlu1 %1734  ;;  %v1730_v49 = vpop.permute.xlu0 %1729  ;;  %1570 = vmatprep.mubr.f32.mxu1 %v937_v17 }
 0x202   :  { %v1737_v24 = vunpack.i.h.bf16 %v1735_v26  ;;  %v1736_v42 = vunpack.i.l.bf16 %v1735_v26  ;;  %v1732_v33 = vunpack.i.h.bf16 %v1730_v49  ;;  %v1731_v57 = vunpack.i.l.bf16 %v1730_v49  ;;  %1571 = vmatmul.mubr.f32.gmra.mrb[4].mxu1 %v938_v41 }
 0x204   :  { %v922_v44 = vsel %vm378_vm6, %v906_v14, %v1731_v57  ;;  %v923_v45 = vsel %vm378_vm6, %v907_v43, %v1732_v33 }
 0x205   :  { %v939_v46 = vsel %vm932_vm7, %v922_v44, %v1736_v42  ;;  %v940_v47 = vsel %vm932_vm7, %v923_v45, %v1737_v24 }
 0x206   :  { %1573 = vmatprep.mubr.f32.mxu1 %v939_v46 }
 0x207   :  { %1574 = vmatmul.mubr.f32.gmra.mrb[6].mxu1 %v940_v47 }
 0x211   :  { %v1745_v13 = vpop.permute.xlu1 %1744  ;;  %v1740_v48 = vpop.permute.xlu0 %1739 }
 0x212   :  { %v1742_v31 = vunpack.i.h.bf16 %v1740_v48  ;;  %v1741_v55 = vunpack.i.l.bf16 %v1740_v48  ;;  %v1747_v19 = vunpack.i.h.bf16 %v1745_v13  ;;  %v1746_v30 = vunpack.i.l.bf16 %v1745_v13 }
 0x214   :  { %v908_v54 = vsel %vm329_vm4, %v2440_v36, %v1741_v55  ;;  %v909_v38 = vsel %vm329_vm4, %v2433_v25, %v1742_v31 }
 0x215   :  { %v1750_v56 = vpop.permute.xlu0 %1749  ;;  %v924_v59 = vsel %vm378_vm6, %v908_v54, %v1746_v30  ;;  %v925_v60 = vsel %vm378_vm6, %v909_v38, %v1747_v19 }
 0x216   :  { %v1752_v53 = vunpack.i.h.bf16 %v1750_v56  ;;  %v1751_v35 = vunpack.i.l.bf16 %v1750_v56 }
 0x218   :  { %v941_v61 = vsel %vm932_vm7, %v924_v59, %v1751_v35  ;;  %v942_v62 = vsel %vm932_vm7, %v925_v60, %v1752_v53 }
 0x219   :  { %1576 = vmatprep.mubr.f32.mxu1 %v941_v61 }
 0x21a   :  { %1577 = vmatmul.mubr.f32.gmra.mrb[8].mxu1 %v942_v62 }
 0x21d   :  { %v1755_v63 = vpop.permute.xlu1 %1754  ;;  %v1760_v2 = vpop.permute.xlu0 %1759 }
 0x21e   :  { %v1757_v9 = vunpack.i.h.bf16 %v1755_v63  ;;  %v1756_v36 = vunpack.i.l.bf16 %v1755_v63  ;;  %v1762_v51 = vunpack.i.h.bf16 %v1760_v2  ;;  %v1761_v3 = vunpack.i.l.bf16 %v1760_v2 }
 0x220   :  { %v910_v25 = vsel %vm329_vm4, %v2447_v0, %v1756_v36  ;;  %v911_v50 = vsel %vm329_vm4, %v2450_v37, %v1757_v9 }
 0x221   :  { %v1765_v11 = vpop.permute.xlu1 %1764  ;;  %v926_v16 = vsel %vm378_vm6, %v910_v25, %v1761_v3  ;;  %v927_v4 = vsel %vm378_vm6, %v911_v50, %v1762_v51 }
 0x222   :  { %v1767_v12 = vunpack.i.h.bf16 %v1765_v11  ;;  %v1766_v15 = vunpack.i.l.bf16 %v1765_v11 }
 0x224   :  { %v943_v20 = vsel %vm932_vm7, %v926_v16, %v1766_v15  ;;  %v944_v6 = vsel %vm932_vm7, %v927_v4, %v1767_v12 }
 0x225   :  { %1579 = vmatprep.mubr.f32.mxu1 %v943_v20 }
 0x226   :  { %1580 = vmatmul.mubr.f32.gmra.mrb[10].mxu1 %v944_v6 }
 0x229   :  { %v1775_v52 = vpop.permute.xlu1 %1774  ;;  %v1770_v21 = vpop.permute.xlu0 %1769 }
 0x22a   :  { %v1772_v18 = vunpack.i.h.bf16 %v1770_v21  ;;  %v1771_v0 = vunpack.i.l.bf16 %v1770_v21  ;;  %v1777_v22 = vunpack.i.h.bf16 %v1775_v52  ;;  %v1776_v32 = vunpack.i.l.bf16 %v1775_v52 }
 0x22c   :  { %v912_v37 = vsel %vm329_vm4, %v2471_v23, %v1771_v0  ;;  %v913_v58 = vsel %vm329_vm4, %v2474_v10, %v1772_v18 }
 0x22d   :  { %v1785_v27 = vpop.permute.xlu1 %1784  ;;  %v1780_v34 = vpop.permute.xlu0 %1779  ;;  %v928_v26 = vsel %vm378_vm6, %v912_v37, %v1776_v32  ;;  %v929_v49 = vsel %vm378_vm6, %v913_v58, %v1777_v22 }
 0x22e   :  { %v1782_v39 = vunpack.i.h.bf16 %v1780_v34  ;;  %v1781_v40 = vunpack.i.l.bf16 %v1780_v34  ;;  %v1787_v17 = vunpack.i.h.bf16 %v1785_v27  ;;  %v1786_v41 = vunpack.i.l.bf16 %v1785_v27 }
 0x230   :  { %v945_v24 = vsel %vm932_vm7, %v928_v26, %v1781_v40  ;;  %v946_v42 = vsel %vm932_vm7, %v929_v49, %v1782_v39  ;;  %v914_v44 = vsel %vm329_vm4, %v2494_v1, %v1786_v41  ;;  %v915_v45 = vsel %vm329_vm4, %v2497_v5, %v1787_v17  ;;  %v1594_v1 = vpop.f32.mrb[16].mxu0 }
 0x231   :  { %v1795_v33 = vpop.permute.xlu1 %1794  ;;  %v1790_v57 = vpop.permute.xlu0 %1789  ;;  %1582 = vmatprep.mubr.f32.mxu1 %v945_v24 }
 0x232   :  { %v1797_v23 = vunpack.i.h.bf16 %v1795_v33  ;;  %v1796_v14 = vunpack.i.l.bf16 %v1795_v33  ;;  %v1792_v10 = vunpack.i.h.bf16 %v1790_v57  ;;  %v1791_v43 = vunpack.i.l.bf16 %v1790_v57  ;;  %1583 = vmatmul.mubr.f32.gmra.mrb[12].mxu1 %v946_v42  ;;  %v1240_v5 = vpop.f32.mrb[17].mxu0 }
 0x233   :  { %v1597_v31 = vpop.f32.mrb[18].mxu0 }
 0x234   :  { %v930_v46 = vsel %vm378_vm6, %v914_v44, %v1791_v43  ;;  %v931_v47 = vsel %vm378_vm6, %v915_v45, %v1792_v10  ;;  %v1250_v55 = vpop.f32.mrb[19].mxu0 }
 0x235   :  { %v947_v13 = vsel %vm932_vm7, %v930_v46, %v1796_v14  ;;  %v948_v48 = vsel %vm932_vm7, %v931_v47, %v1797_v23  ;;  %v1600_v19 = vpop.f32.mrb[20].mxu0 }
 0x236   :  { %1585 = vmatprep.mubr.f32.mxu1 %v947_v13  ;;  %v1260_v30 = vpop.f32.mrb[21].mxu0 }
 0x237   :  { %1586 = vmatmul.mubr.f32.gmra.mrb[14].mxu1 %v948_v48  ;;  %v1603_v54 = vpop.f32.mrb[22].mxu0 }
 0x238   :  { %1610 = vmatprep.mubr.msk.f32.mxu1 %vm312_vm3, %v2145_v8  ;;  %v1270_v38 = vpop.f32.mrb[23].mxu0 }
 0x239   :  { %v2597_v56 = vpop.f32.mrb[24].mxu0 }
 0x23a   :  { %v2599_v8 = vpop.f32.mrb[25].mxu0 }
 0x23b   :  { %1611 = vmatmul.mubr.msk.f32.vlgmr.msra.gmra.mrb[16].mxu1 %vm312_vm3, %v2142_v7  ;;  %v2601_v53 = vpop.f32.mrb[26].mxu0 }
 0x23c   :  { %1613 = vmatprep.mubr.msk.f32.mxu1 %vm312_vm3, %v2166_v29  ;;  %v2603_v7 = vpop.f32.mrb[27].mxu0  ;;  %v2613_v29 = vld [vmem:[%s2669_s6] ss:$0 sm:$0xff] }
 0x23d   :  { %v1246_v61 = vadd.f32 %v1594_v1, %v2613_v29  ;;  %v1241_v63 = vadd.f32 %v2613_v29, %v1240_v5  ;;  %v1256_v15 = vadd.f32 %v1597_v31, %v2613_v29  ;;  %v1251_v4 = vadd.f32 %v2613_v29, %v1250_v55 }
 0x23e   :  { %v1266_v58 = vadd.f32 %v1600_v19, %v2613_v29  ;;  %v1261_v34 = vadd.f32 %v2613_v29, %v1260_v30  ;;  %v1276_v42 = vadd.f32 %v1603_v54, %v2613_v29  ;;  %v1271_v23 = vadd.f32 %v2613_v29, %v1270_v38 }
 0x23f   :  { %1614 = vmatmul.mubr.msk.f32.gmra.mrb[18].mxu1 %vm312_vm3, %v2163_v28  ;;  %v2608_v28 = vld [vmem:[%s2667_s4] ss:$0 sm:$0xff]  ;;  %v1286_v5 = vadd.f32 %v2597_v56, %v2613_v29  ;;  %v1281_v55 = vadd.f32 %v2613_v29, %v2599_v8  ;;  %v1296_v56 = vadd.f32 %v2601_v53, %v2613_v29  ;;  %v1291_v8 = vadd.f32 %v2613_v29, %v2603_v7  ;;  %s1827_s4 = smov [#allocation2]  }
 0x240   :  { %s1372_s6 = sshll.u32 %s1827_s4, 4  ;;  %s1373_s6 = int_to_ptr.vmem [resolvable:$true] %s1372_s6 }
 0x241   :  { %s1798_s27 = scalar_lea.vmem %s1373_s6, 2048  ;;  %p1803_p1 = scmp.lt.s32.totalorder %s1373_s6, %s1373_s6 }
 0x242   :  { %p1799_p0 = scmp.ne.s32.totalorder %s1373_s6, %s1798_s27  ;;  %p1804_p2 = scmp.lt.s32.totalorder %s1798_s27, %s1798_s27 }
 0x244   :  { %p1805_p3 = por %p1804_p2, %p1803_p1 }
 0x246   :  { %p1806_p4 = pnand %p1805_p3, %p1799_p0 }
 0x2bd   :  { %v1566_v35 = vpop.f32.mrb[0].mxu1 }
 0x2be   :  { %v1044_v59 = vadd.f32 %v1566_v35, %v2608_v28  ;;  %v1038_v60 = vpop.f32.mrb[1].mxu1 }
 0x2bf   :  { %v1039_v62 = vadd.f32 %v2608_v28, %v1038_v60 }
 0x2c0   :  { %v1118_v2 = vmax.f32 %v1044_v59, 0.0 }
 0x2c1   :  { %v1117_v9 = vmax.f32 %v1039_v62, 0.0 }
 0x2c2   :  { %v1320_v36 = vadd.f32 %v1246_v61, %v1118_v2 }
 0x2c3   :  { %v1319_v51 = vadd.f32 %v1241_v63, %v1117_v9 }
 0x2c4   :  { %v1336_v3 = vmax.f32 %v1320_v36, 0.0 }
 0x2c5   :  { %v1335_v25 = vmax.f32 %v1319_v51, 0.0 }
 0x2c6   :  { %1352 = vst [vmem:[#allocation2 + $0x8] sm:$0xff] %v1336_v3 }
 0x2c7   :  { %1351 = vst [vmem:[#allocation2] sm:$0xff] %v1335_v25 }
 0x2c9   :  { %v1569_v50 = vpop.f32.mrb[2].mxu1 }
 0x2ca   :  { %v1054_v11 = vadd.f32 %v1569_v50, %v2608_v28  ;;  %v1048_v12 = vpop.f32.mrb[3].mxu1 }
 0x2cb   :  { %v1049_v16 = vadd.f32 %v2608_v28, %v1048_v12 }
 0x2cc   :  { %v1120_v20 = vmax.f32 %v1054_v11, 0.0 }
 0x2cd   :  { %v1119_v6 = vmax.f32 %v1049_v16, 0.0 }
 0x2ce   :  { %v1322_v52 = vadd.f32 %v1256_v15, %v1120_v20 }
 0x2cf   :  { %v1321_v21 = vadd.f32 %v1251_v4, %v1119_v6 }
 0x2d0   :  { %v1338_v18 = vmax.f32 %v1322_v52, 0.0 }
 0x2d1   :  { %v1337_v0 = vmax.f32 %v1321_v21, 0.0 }
 0x2d2   :  { %1354 = vst [vmem:[#allocation2 + $0x18] sm:$0xff] %v1338_v18 }
 0x2d3   :  { %1353 = vst [vmem:[#allocation2 + $0x10] sm:$0xff] %v1337_v0 }
 0x2d5   :  { %v1572_v22 = vpop.f32.mrb[4].mxu1 }
 0x2d6   :  { %v1064_v32 = vadd.f32 %v1572_v22, %v2608_v28  ;;  %v1058_v37 = vpop.f32.mrb[5].mxu1 }
 0x2d7   :  { %v1059_v27 = vadd.f32 %v2608_v28, %v1058_v37 }
 0x2d8   :  { %v1122_v39 = vmax.f32 %v1064_v32, 0.0 }
 0x2d9   :  { %v1121_v40 = vmax.f32 %v1059_v27, 0.0 }
 0x2da   :  { %v1324_v17 = vadd.f32 %v1266_v58, %v1122_v39  ;;  %v1575_v41 = vpop.f32.mrb[6].mxu1 }
 0x2db   :  { %v1323_v26 = vadd.f32 %v1261_v34, %v1121_v40  ;;  %v1074_v49 = vadd.f32 %v1575_v41, %v2608_v28  ;;  %v1068_v24 = vpop.f32.mrb[7].mxu1 }
 0x2dc   :  { %v1340_v33 = vmax.f32 %v1324_v17, 0.0  ;;  %v1069_v57 = vadd.f32 %v2608_v28, %v1068_v24 }
 0x2dd   :  { %v1339_v14 = vmax.f32 %v1323_v26, 0.0  ;;  %v1124_v10 = vmax.f32 %v1074_v49, 0.0 }
 0x2de   :  { %1356 = vst [vmem:[#allocation2 + $0x28] sm:$0xff] %v1340_v33  ;;  %v1123_v43 = vmax.f32 %v1069_v57, 0.0 }
 0x2df   :  { %1355 = vst [vmem:[#allocation2 + $0x20] sm:$0xff] %v1339_v14  ;;  %v1326_v44 = vadd.f32 %v1276_v42, %v1124_v10 }
 0x2e0   :  { %v1325_v45 = vadd.f32 %v1271_v23, %v1123_v43 }
 0x2e1   :  { %v1342_v46 = vmax.f32 %v1326_v44, 0.0 }
 0x2e2   :  { %v1341_v47 = vmax.f32 %v1325_v45, 0.0 }
 0x2e3   :  { %1358 = vst [vmem:[#allocation2 + $0x38] sm:$0xff] %v1342_v46 }
 0x2e4   :  { %1357 = vst [vmem:[#allocation2 + $0x30] sm:$0xff] %v1341_v47 }
 0x2ed   :  { %v1578_v13 = vpop.f32.mrb[8].mxu1 }
 0x2ee   :  { %v1084_v48 = vadd.f32 %v1578_v13, %v2608_v28  ;;  %v1078_v1 = vpop.f32.mrb[9].mxu1 }
 0x2ef   :  { %v1079_v31 = vadd.f32 %v2608_v28, %v1078_v1 }
 0x2f0   :  { %v1126_v19 = vmax.f32 %v1084_v48, 0.0 }
 0x2f1   :  { %v1125_v30 = vmax.f32 %v1079_v31, 0.0 }
 0x2f2   :  { %v1328_v54 = vadd.f32 %v1286_v5, %v1126_v19 }
 0x2f3   :  { %v1327_v38 = vadd.f32 %v1281_v55, %v1125_v30 }
 0x2f4   :  { %v1344_v35 = vmax.f32 %v1328_v54, 0.0 }
 0x2f5   :  { %v1343_v59 = vmax.f32 %v1327_v38, 0.0 }
 0x2f6   :  { %1360 = vst [vmem:[#allocation2 + $0x48] sm:$0xff] %v1344_v35 }
 0x2f7   :  { %1359 = vst [vmem:[#allocation2 + $0x40] sm:$0xff] %v1343_v59 }
 0x2f9   :  { %v1581_v60 = vpop.f32.mrb[10].mxu1 }
 0x2fa   :  { %v1094_v61 = vadd.f32 %v1581_v60, %v2608_v28  ;;  %v1088_v62 = vpop.f32.mrb[11].mxu1 }
 0x2fb   :  { %v1089_v63 = vadd.f32 %v2608_v28, %v1088_v62 }
 0x2fc   :  { %v1128_v2 = vmax.f32 %v1094_v61, 0.0 }
 0x2fd   :  { %v1127_v9 = vmax.f32 %v1089_v63, 0.0 }
 0x2fe   :  { %v1330_v36 = vadd.f32 %v1296_v56, %v1128_v2 }
 0x2ff   :  { %v1329_v51 = vadd.f32 %v1291_v8, %v1127_v9 }
 0x300   :  { %v1346_v3 = vmax.f32 %v1330_v36, 0.0 }
 0x301   :  { %v1345_v25 = vmax.f32 %v1329_v51, 0.0 }
 0x302   :  { %1362 = vst [vmem:[#allocation2 + $0x58] sm:$0xff] %v1346_v3 }
 0x303   :  { %1361 = vst [vmem:[#allocation2 + $0x50] sm:$0xff] %v1345_v25 }
 0x305   :  { %v1584_v50 = vpop.f32.mrb[12].mxu1 }
 0x306   :  { %v1098_v11 = vpop.f32.mrb[13].mxu1  ;;  %v1104_v15 = vadd.f32 %v1584_v50, %v2608_v28 }
 0x307   :  { %v1099_v53 = vadd.f32 %v2608_v28, %v1098_v11 }
 0x308   :  { %v1130_v20 = vmax.f32 %v1104_v15, 0.0 }
 0x309   :  { %v1129_v21 = vmax.f32 %v1099_v53, 0.0 }
 0x30a   :  { %v1587_v12 = vpop.f32.mrb[14].mxu1 }
 0x30b   :  { %v1108_v16 = vpop.f32.mrb[15].mxu1  ;;  %v1114_v7 = vadd.f32 %v1587_v12, %v2608_v28 }
 0x30c   :  { %v1109_v18 = vadd.f32 %v2608_v28, %v1108_v16 }
 0x30d   :  { %v1132_v58 = vmax.f32 %v1114_v7, 0.0 }
 0x30e   :  { %v1612_v4 = vpop.f32.mrb[16].mxu1  ;;  %v1131_v40 = vmax.f32 %v1109_v18, 0.0 }
 0x30f   :  { %v1306_v6 = vadd.f32 %v1612_v4, %v2613_v29  ;;  %v1300_v52 = vpop.f32.mrb[17].mxu1 }
 0x310   :  { %v1301_v0 = vadd.f32 %v2613_v29, %v1300_v52 }
 0x311   :  { %v1332_v22 = vadd.f32 %v1306_v6, %v1130_v20 }
 0x312   :  { %v1331_v32 = vadd.f32 %v1301_v0, %v1129_v21  ;;  %v1615_v37 = vpop.f32.mrb[18].mxu1 }
 0x313   :  { %v1348_v27 = vmax.f32 %v1332_v22, 0.0  ;;  %v1316_v34 = vadd.f32 %v1615_v37, %v2613_v29  ;;  %v1310_v39 = vpop.f32.mrb[19].mxu1 }
 0x314   :  { %v1347_v17 = vmax.f32 %v1331_v32, 0.0  ;;  %v1311_v41 = vadd.f32 %v2613_v29, %v1310_v39 }
 0x315   :  { %1364 = vst [vmem:[#allocation2 + $0x68] sm:$0xff] %v1348_v27  ;;  %v1334_v26 = vadd.f32 %v1316_v34, %v1132_v58 }
 0x316   :  { %1363 = vst [vmem:[#allocation2 + $0x60] sm:$0xff] %v1347_v17  ;;  %v1333_v28 = vadd.f32 %v1311_v41, %v1131_v40 }
 0x317   :  { %v1350_v49 = vmax.f32 %v1334_v26, 0.0 }
 0x318   :  { %v1349_v24 = vmax.f32 %v1333_v28, 0.0 }
 0x319   :  { %1366 = vst [vmem:[#allocation2 + $0x78] sm:$0xff] %v1350_v49 }
 0x31a   :  { %1365 = vst [vmem:[#allocation2 + $0x70] sm:$0xff] %v1349_v24 }
 0x31b   :  { %1809 = shalt.err (!%p1806_p4)
}
 0x31c   :  { %s1810_s9 = scalar_lea.hbm %s2670_s7, 2048 }
 0x31d   :  { %p1811_p5 = scmp.ne.s32.totalorder %s2670_s7, %s1810_s9  ;;  %p1814_p6 = scmp.lt.u32.totalorder %s1810_s9, %s2670_s7 }
 0x31f   :  { %p1816_p7 = pnand %p1814_p6, %p1811_p5 }
 0x321   :  { %1819 = shalt.err (!%p1816_p7)
}
 0x322   :  { %s1828_s0 = smov 128   ;;  %s1829_s8 = smov 8  }
 0x323   :  { %1378 = dma.vmem_to_hbm [thread:$0]  %s1373_s6, 2048, %s2670_s7, [#allocation3], %s1828_s0, %s1828_s0, %s1829_s8  }
 0x324   :  { %1820 = dma.done.wait [#allocation3], 2048  }
 0x325   :  { %1821 = vsyncadd [#allocation3], 4294965248 }
 0x326   :  { %1382 = vsyncpa [#allocation3], 1 }

</bundles_post_ra>
